<compile_context>
chip_gen: v7x
topology: tpu7x:2x2x1
jax: 0.10.0
libtpu: 0.0.40
codegen_flags: <defaults>
</compile_context>

<pallas_src>
import jax
import jax.numpy as jnp
import numpy as np
from jax import lax
from jax.experimental import pallas as pl
from jax.experimental.pallas import tpu as pltpu


def _round_up(x, m):
    return (x + m - 1) // m * m


def _conv_pool_matrix(w, l_in):
    """Banded matrix for Conv1d(k=3, stride=1, pad=1) followed by MaxPool1d(2,2).

    w: (Cout, Cin, 3).  The input slab stacks channels on sublanes: row
    ci*l_in + p holds input channel ci at position p.  Returns W of shape
    (2*Cout*(l_in//2), Cin*l_in): the top half computes the convolution at
    even positions, the bottom half at odd positions, so the pooled, compact
    activation is max(top, bottom), with channel co of the next slab at rows
    [co*(l_in//2), (co+1)*(l_in//2)).
    """
    cout, cin, K = w.shape
    l_half = l_in // 2
    halves = []
    for parity in (0, 1):
        acc = None
        for k in range(K):
            sel = np.zeros((l_half, l_in), np.float32)
            m = np.arange(l_half)
            col = 2 * m + parity + k - 1          # input position of tap k
            ok = (col >= 0) & (col < l_in)        # zero padding at the ends
            sel[m[ok], col[ok]] = 1.0
            term = jnp.kron(w[:, :, k].astype(jnp.float32), jnp.asarray(sel))
            acc = term if acc is None else acc + term
        halves.append(acc)
    return jnp.concatenate(halves, axis=0)


def _bias_col(b, l_half):
    """Per-row bias column matching _conv_pool_matrix's row layout."""
    rep = jnp.repeat(b.astype(jnp.float32), l_half)
    return jnp.tile(rep, 2).reshape(-1, 1)


def cnn_kernel(x_ref, w1_ref, b1_ref, w2_ref, b2_ref, w3_ref, b3_ref,
               wl1_ref, bl1_ref, wl2_ref, bl2_ref, o_ref):
    f32 = jnp.float32
    x = x_ref[...]                                            # (L, TB)

    # layer1: Conv1d(1, 8) + MaxPool -- one MXU matmul + compacting max
    y1 = jnp.dot(w1_ref[...], x, preferred_element_type=f32) + b1_ref[...]
    h1 = y1.shape[0] // 2
    m1 = jnp.maximum(y1[:h1], y1[h1:])                        # (8*L/2, TB)

    # layer2: Conv1d(8, 16) + MaxPool
    y2 = jnp.dot(w2_ref[...], m1, preferred_element_type=f32) + b2_ref[...]
    h2 = y2.shape[0] // 2
    m2 = jnp.maximum(y2[:h2], y2[h2:])                        # (16*L/4, TB)

    # layer3: Conv1d(16, 1) + MaxPool (+ Flatten: m3 is the feature slab)
    y3 = jnp.dot(w3_ref[...], m2, preferred_element_type=f32) + b3_ref[...]
    h3 = y3.shape[0] // 2
    m3 = jnp.maximum(y3[:h3], y3[h3:])                        # (F, TB)

    # layer4/5: Linear + ReLU, Linear -- lane-dense in batch
    h = jnp.maximum(jnp.dot(wl1_ref[...], m3, preferred_element_type=f32)
                    + bl1_ref[...], 0.0)                      # (H, TB)
    o_ref[...] = (jnp.dot(wl2_ref[...], h, preferred_element_type=f32)
                  + bl2_ref[...])                             # (O, TB)


def cnn_forward(x_ncl, params):
    """x_ncl: (B, 1, L) float32 (PyTorch NCL).  Returns (B, out_dim)."""
    wc1, bc1, wc2, bc2, wc3, bc3, wl1, bl1, wl2, bl2 = params
    B, C, L = x_ncl.shape
    assert C == 1 and L % 8 == 0
    H, O = wl1.shape[0], wl2.shape[0]
    F = L // 8
    assert wl1.shape[1] == F

    # Batch tile: full 128 lanes even for tiny batches (same cycles as a
    # narrow tile, unmasked lane-dense stores); 256 for large batches to
    # amortize the ~0.35us per-step overhead and fill the v6e/v7x MXU width.
    TB = 128 if B <= 256 else 256
    B_pad = _round_up(max(B, TB), TB)
    G = B_pad // TB

    # ---- wrapper-side layout / weight restructuring (done once by XLA) ----
    x2 = x_ncl.astype(jnp.float32).reshape(B, L)
    x2 = jnp.pad(x2, ((0, B_pad - B), (0, 0)))
    x_t = x2.T                                                # (L, B_pad)

    w1m = _conv_pool_matrix(wc1, L)                           # (8*L,   L)
    b1c = _bias_col(bc1, L // 2)
    w2m = _conv_pool_matrix(wc2, L // 2)                      # (8*L,   4*L)
    b2c = _bias_col(bc2, L // 4)
    w3m = _conv_pool_matrix(wc3, L // 4)                      # (L/4,   4*L)
    b3c = _bias_col(bc3, L // 8)
    wl1m = wl1.astype(jnp.float32)                            # (H, F) -- no expansion
    bl1c = bl1.astype(jnp.float32).reshape(H, 1)
    wl2m = wl2.astype(jnp.float32)
    bl2c = bl2.astype(jnp.float32).reshape(O, 1)

    def const(a):  # resident VMEM block, constant index map -> fetched once
        return pl.BlockSpec(a.shape, lambda g: (0, 0))

    out_t = pl.pallas_call(
        cnn_kernel,
        out_shape=jax.ShapeDtypeStruct((O, B_pad), jnp.float32),
        grid=(G,),
        in_specs=[
            pl.BlockSpec((L, TB), lambda g: (0, g)),          # x batch tile
            const(w1m), const(b1c), const(w2m), const(b2c),
            const(w3m), const(b3c),
            const(wl1m), const(bl1c), const(wl2m), const(bl2c),
        ],
        out_specs=pl.BlockSpec((O, TB), lambda g: (0, g)),
        compiler_params=pltpu.CompilerParams(
            dimension_semantics=("parallel",)),
    )(x_t, w1m, b1c, w2m, b2c, w3m, b3c, wl1m, bl1c, wl2m, bl2c)

    return out_t.T[:B]                                        # (B, O)


def reference_forward(x, params):
    """Pure-JAX reference matching the PyTorch module semantics."""
    wc1, bc1, wc2, bc2, wc3, bc3, wl1, bl1, wl2, bl2 = params

    def conv1d(x, w, b):
        dn = lax.conv_dimension_numbers(x.shape, w.shape, ('NCH', 'OIH', 'NCH'))
        y = lax.conv_general_dilated(x, w, window_strides=(1,),
                                     padding=[(1, 1)], dimension_numbers=dn)
        return y + b[None, :, None]

    def maxpool2(x):
        B, C, L = x.shape
        return x.reshape(B, C, L // 2, 2).max(-1)

    a = maxpool2(conv1d(x, wc1, bc1))
    a = maxpool2(conv1d(a, wc2, bc2))
    a = maxpool2(conv1d(a, wc3, bc3))
    flat = a.reshape(a.shape[0], -1)
    h = jnp.maximum(flat @ wl1.T + bl1, 0.0)
    return h @ wl2.T + bl2


if __name__ == "__main__":
    in_dim, hidden_dim, out_dim, batch = 64, 32, 8, 2
    F = in_dim // 8

    key = jax.random.PRNGKey(0)
    ks = jax.random.split(key, 11)

    def u(k, shape, fan_in):
        bound = 1.0 / np.sqrt(fan_in)
        return jax.random.uniform(k, shape, jnp.float32, -bound, bound)

    # deterministic parameter init (shapes follow the nn.Module __init__)
    wc1 = u(ks[0], (8, 1, 3), 1 * 3);   bc1 = u(ks[1], (8,), 1 * 3)
    wc2 = u(ks[2], (16, 8, 3), 8 * 3);  bc2 = u(ks[3], (16,), 8 * 3)
    wc3 = u(ks[4], (1, 16, 3), 16 * 3); bc3 = u(ks[5], (1,), 16 * 3)
    wl1 = u(ks[6], (hidden_dim, F), F); bl1 = u(ks[7], (hidden_dim,), F)
    wl2 = u(ks[8], (out_dim, hidden_dim), hidden_dim)
    bl2 = u(ks[9], (out_dim,), hidden_dim)
    params = (wc1, bc1, wc2, bc2, wc3, bc3, wl1, bl1, wl2, bl2)

    x = jax.random.normal(ks[10], (batch, 1, in_dim), jnp.float32)

    out = jax.block_until_ready(cnn_forward(x, params))
    ref = jax.block_until_ready(reference_forward(x, params))
    assert out.shape == (batch, out_dim)
    np.testing.assert_allclose(np.asarray(out), np.asarray(ref),
                               rtol=1e-4, atol=1e-4)
    print("KERNEL_OK")
</pallas_src>

<mosaic_0001>
module attributes {stable_mosaic.version = 11 : i64} {
  func.func @cnn_kernel(%arg0: i32, %arg1: memref<64x128xf32, #tpu.memory_space<vmem>>, %arg2: memref<512x64xf32, #tpu.memory_space<vmem>>, %arg3: memref<512x1xf32, #tpu.memory_space<vmem>>, %arg4: memref<512x256xf32, #tpu.memory_space<vmem>>, %arg5: memref<512x1xf32, #tpu.memory_space<vmem>>, %arg6: memref<16x256xf32, #tpu.memory_space<vmem>>, %arg7: memref<16x1xf32, #tpu.memory_space<vmem>>, %arg8: memref<32x8xf32, #tpu.memory_space<vmem>>, %arg9: memref<32x1xf32, #tpu.memory_space<vmem>>, %arg10: memref<8x32xf32, #tpu.memory_space<vmem>>, %arg11: memref<8x1xf32, #tpu.memory_space<vmem>>, %arg12: memref<8x128xf32, #tpu.memory_space<vmem>>) attributes {dimension_semantics = [#tpu.dimension_semantics<parallel>], iteration_bounds = array<i64: 1>, scalar_prefetch = 0 : i64, scratch_operands = 0 : i64, tpu.core_type = #tpu.core_type<tc>, window_params = [{transform_indices = @transform_0, window_bounds = array<i64: 64, 128>}, {pipeline_mode = #tpu.pipeline_mode<synchronous>, transform_indices = @transform_1, window_bounds = array<i64: 512, 64>}, {pipeline_mode = #tpu.pipeline_mode<synchronous>, transform_indices = @transform_2, window_bounds = array<i64: 512, 1>}, {pipeline_mode = #tpu.pipeline_mode<synchronous>, transform_indices = @transform_3, window_bounds = array<i64: 512, 256>}, {pipeline_mode = #tpu.pipeline_mode<synchronous>, transform_indices = @transform_4, window_bounds = array<i64: 512, 1>}, {pipeline_mode = #tpu.pipeline_mode<synchronous>, transform_indices = @transform_5, window_bounds = array<i64: 16, 256>}, {pipeline_mode = #tpu.pipeline_mode<synchronous>, transform_indices = @transform_6, window_bounds = array<i64: 16, 1>}, {pipeline_mode = #tpu.pipeline_mode<synchronous>, transform_indices = @transform_7, window_bounds = array<i64: 32, 8>}, {pipeline_mode = #tpu.pipeline_mode<synchronous>, transform_indices = @transform_8, window_bounds = array<i64: 32, 1>}, {pipeline_mode = #tpu.pipeline_mode<synchronous>, transform_indices = @transform_9, window_bounds = array<i64: 8, 32>}, {pipeline_mode = #tpu.pipeline_mode<synchronous>, transform_indices = @transform_10, window_bounds = array<i64: 8, 1>}, {transform_indices = @transform_11, window_bounds = array<i64: 8, 128>}]} {
    %c0 = arith.constant 0 : index
    %c0_0 = arith.constant 0 : index
    %0 = vector.load %arg1[%c0, %c0_0] : memref<64x128xf32, #tpu.memory_space<vmem>>, vector<64x128xf32>
    %c0_1 = arith.constant 0 : index
    %c0_2 = arith.constant 0 : index
    %1 = vector.load %arg2[%c0_1, %c0_2] : memref<512x64xf32, #tpu.memory_space<vmem>>, vector<512x64xf32>
    %cst = arith.constant dense<0.000000e+00> : vector<512x128xf32>
    %2 = tpu.matmul %1, %0, %cst {dimension_numbers = #tpu.dot_dimension_numbers<[1], [0], [0], [1], [0, 0, 1, 1], [], []>} : vector<512x64xf32>, vector<64x128xf32>, vector<512x128xf32> -> vector<512x128xf32>
    %c0_3 = arith.constant 0 : index
    %c0_4 = arith.constant 0 : index
    %3 = vector.load %arg3[%c0_3, %c0_4] : memref<512x1xf32, #tpu.memory_space<vmem>>, vector<512x1xf32>
    %4 = vector.broadcast %3 : vector<512x1xf32> to vector<512x128xf32>
    %5 = arith.addf %2, %4 : vector<512x128xf32>
    %6 = vector.extract_strided_slice %5 {offsets = [0, 0], sizes = [256, 128], strides = [1, 1]} : vector<512x128xf32> to vector<256x128xf32>
    %7 = vector.extract_strided_slice %5 {offsets = [256, 0], sizes = [256, 128], strides = [1, 1]} : vector<512x128xf32> to vector<256x128xf32>
    %8 = arith.maximumf %6, %7 : vector<256x128xf32>
    %c0_5 = arith.constant 0 : index
    %c0_6 = arith.constant 0 : index
    %9 = vector.load %arg4[%c0_5, %c0_6] : memref<512x256xf32, #tpu.memory_space<vmem>>, vector<512x256xf32>
    %cst_7 = arith.constant dense<0.000000e+00> : vector<512x128xf32>
    %10 = tpu.matmul %9, %8, %cst_7 {dimension_numbers = #tpu.dot_dimension_numbers<[1], [0], [0], [1], [0, 0, 1, 1], [], []>} : vector<512x256xf32>, vector<256x128xf32>, vector<512x128xf32> -> vector<512x128xf32>
    %c0_8 = arith.constant 0 : index
    %c0_9 = arith.constant 0 : index
    %11 = vector.load %arg5[%c0_8, %c0_9] : memref<512x1xf32, #tpu.memory_space<vmem>>, vector<512x1xf32>
    %12 = vector.broadcast %11 : vector<512x1xf32> to vector<512x128xf32>
    %13 = arith.addf %10, %12 : vector<512x128xf32>
    %14 = vector.extract_strided_slice %13 {offsets = [0, 0], sizes = [256, 128], strides = [1, 1]} : vector<512x128xf32> to vector<256x128xf32>
    %15 = vector.extract_strided_slice %13 {offsets = [256, 0], sizes = [256, 128], strides = [1, 1]} : vector<512x128xf32> to vector<256x128xf32>
    %16 = arith.maximumf %14, %15 : vector<256x128xf32>
    %c0_10 = arith.constant 0 : index
    %c0_11 = arith.constant 0 : index
    %17 = vector.load %arg6[%c0_10, %c0_11] : memref<16x256xf32, #tpu.memory_space<vmem>>, vector<16x256xf32>
    %cst_12 = arith.constant dense<0.000000e+00> : vector<16x128xf32>
    %18 = tpu.matmul %17, %16, %cst_12 {dimension_numbers = #tpu.dot_dimension_numbers<[1], [0], [0], [1], [0, 0, 1, 1], [], []>} : vector<16x256xf32>, vector<256x128xf32>, vector<16x128xf32> -> vector<16x128xf32>
    %c0_13 = arith.constant 0 : index
    %c0_14 = arith.constant 0 : index
    %19 = vector.load %arg7[%c0_13, %c0_14] : memref<16x1xf32, #tpu.memory_space<vmem>>, vector<16x1xf32>
    %20 = vector.broadcast %19 : vector<16x1xf32> to vector<16x128xf32>
    %21 = arith.addf %18, %20 : vector<16x128xf32>
    %22 = vector.extract_strided_slice %21 {offsets = [0, 0], sizes = [8, 128], strides = [1, 1]} : vector<16x128xf32> to vector<8x128xf32>
    %23 = vector.extract_strided_slice %21 {offsets = [8, 0], sizes = [8, 128], strides = [1, 1]} : vector<16x128xf32> to vector<8x128xf32>
    %24 = arith.maximumf %22, %23 : vector<8x128xf32>
    %c0_15 = arith.constant 0 : index
    %c0_16 = arith.constant 0 : index
    %25 = vector.load %arg8[%c0_15, %c0_16] : memref<32x8xf32, #tpu.memory_space<vmem>>, vector<32x8xf32>
    %cst_17 = arith.constant dense<0.000000e+00> : vector<32x128xf32>
    %26 = tpu.matmul %25, %24, %cst_17 {dimension_numbers = #tpu.dot_dimension_numbers<[1], [0], [0], [1], [0, 0, 1, 1], [], []>} : vector<32x8xf32>, vector<8x128xf32>, vector<32x128xf32> -> vector<32x128xf32>
    %c0_18 = arith.constant 0 : index
    %c0_19 = arith.constant 0 : index
    %27 = vector.load %arg9[%c0_18, %c0_19] : memref<32x1xf32, #tpu.memory_space<vmem>>, vector<32x1xf32>
    %28 = vector.broadcast %27 : vector<32x1xf32> to vector<32x128xf32>
    %29 = arith.addf %26, %28 : vector<32x128xf32>
    %cst_20 = arith.constant 0.000000e+00 : f32
    %30 = vector.broadcast %cst_20 : f32 to vector<32x128xf32>
    %31 = arith.maximumf %29, %30 : vector<32x128xf32>
    %c0_21 = arith.constant 0 : index
    %c0_22 = arith.constant 0 : index
    %32 = vector.load %arg10[%c0_21, %c0_22] : memref<8x32xf32, #tpu.memory_space<vmem>>, vector<8x32xf32>
    %cst_23 = arith.constant dense<0.000000e+00> : vector<8x128xf32>
    %33 = tpu.matmul %32, %31, %cst_23 {dimension_numbers = #tpu.dot_dimension_numbers<[1], [0], [0], [1], [0, 0, 1, 1], [], []>} : vector<8x32xf32>, vector<32x128xf32>, vector<8x128xf32> -> vector<8x128xf32>
    %c0_24 = arith.constant 0 : index
    %c0_25 = arith.constant 0 : index
    %34 = vector.load %arg11[%c0_24, %c0_25] : memref<8x1xf32, #tpu.memory_space<vmem>>, vector<8x1xf32>
    %35 = vector.broadcast %34 : vector<8x1xf32> to vector<8x128xf32>
    %36 = arith.addf %33, %35 : vector<8x128xf32>
    %c0_26 = arith.constant 0 : index
    %c0_27 = arith.constant 0 : index
    %37 = vector.load %arg12[%c0_26, %c0_27] : memref<8x128xf32, #tpu.memory_space<vmem>>, vector<8x128xf32>
    tpu.vector_store %arg12[%c0_26, %c0_27], %36 {strides = array<i32>} : memref<8x128xf32, #tpu.memory_space<vmem>>, vector<8x128xf32>,
    return
  }
  func.func @transform_0(%arg0: i32) -> (i32, i32) {
    %c0_i32 = arith.constant 0 : i32
    %c0_i32_0 = arith.constant 0 : i32
    return %c0_i32, %arg0 : i32, i32
  }
  func.func @transform_1(%arg0: i32) -> (i32, i32) {
    %c0_i32 = arith.constant 0 : i32
    %c0_i32_0 = arith.constant 0 : i32
    %c0_i32_1 = arith.constant 0 : i32
    return %c0_i32, %c0_i32_0 : i32, i32
  }
  func.func @transform_2(%arg0: i32) -> (i32, i32) {
    %c0_i32 = arith.constant 0 : i32
    %c0_i32_0 = arith.constant 0 : i32
    %c0_i32_1 = arith.constant 0 : i32
    return %c0_i32, %c0_i32_0 : i32, i32
  }
  func.func @transform_3(%arg0: i32) -> (i32, i32) {
    %c0_i32 = arith.constant 0 : i32
    %c0_i32_0 = arith.constant 0 : i32
    %c0_i32_1 = arith.constant 0 : i32
    return %c0_i32, %c0_i32_0 : i32, i32
  }
  func.func @transform_4(%arg0: i32) -> (i32, i32) {
    %c0_i32 = arith.constant 0 : i32
    %c0_i32_0 = arith.constant 0 : i32
    %c0_i32_1 = arith.constant 0 : i32
    return %c0_i32, %c0_i32_0 : i32, i32
  }
  func.func @transform_5(%arg0: i32) -> (i32, i32) {
    %c0_i32 = arith.constant 0 : i32
    %c0_i32_0 = arith.constant 0 : i32
    %c0_i32_1 = arith.constant 0 : i32
    return %c0_i32, %c0_i32_0 : i32, i32
  }
  func.func @transform_6(%arg0: i32) -> (i32, i32) {
    %c0_i32 = arith.constant 0 : i32
    %c0_i32_0 = arith.constant 0 : i32
    %c0_i32_1 = arith.constant 0 : i32
    return %c0_i32, %c0_i32_0 : i32, i32
  }
  func.func @transform_7(%arg0: i32) -> (i32, i32) {
    %c0_i32 = arith.constant 0 : i32
    %c0_i32_0 = arith.constant 0 : i32
    %c0_i32_1 = arith.constant 0 : i32
    return %c0_i32, %c0_i32_0 : i32, i32
  }
  func.func @transform_8(%arg0: i32) -> (i32, i32) {
    %c0_i32 = arith.constant 0 : i32
    %c0_i32_0 = arith.constant 0 : i32
    %c0_i32_1 = arith.constant 0 : i32
    return %c0_i32, %c0_i32_0 : i32, i32
  }
  func.func @transform_9(%arg0: i32) -> (i32, i32) {
    %c0_i32 = arith.constant 0 : i32
    %c0_i32_0 = arith.constant 0 : i32
    %c0_i32_1 = arith.constant 0 : i32
    return %c0_i32, %c0_i32_0 : i32, i32
  }
  func.func @transform_10(%arg0: i32) -> (i32, i32) {
    %c0_i32 = arith.constant 0 : i32
    %c0_i32_0 = arith.constant 0 : i32
    %c0_i32_1 = arith.constant 0 : i32
    return %c0_i32, %c0_i32_0 : i32, i32
  }
  func.func @transform_11(%arg0: i32) -> (i32, i32) {
    %c0_i32 = arith.constant 0 : i32
    %c0_i32_0 = arith.constant 0 : i32
    return %c0_i32, %arg0 : i32, i32
  }
}

</mosaic_0001>

<bundles_post_ra>
// kernel: tpu_custom_call.1
= control target key start
LH: loop header
LB: loop body
LE: loop exit
PB: predicated region body
PF: predicated region fallthrough
CT: control target
= control target key end

     0   :  { %v2837_v3 = vmov 0   ;;  %vm495_vm0 = vcmask 523264   ;;  %s4600_s0 = inlined_call_operand.vmem [shape: f32[64,128], index: 0, kind: input, shape index: {}]   ;;  %s4601_s1 = inlined_call_operand.vmem [shape: f32[512,64], index: 1, kind: input, shape index: {}]   ;;  %s4602_s2 = inlined_call_operand.vmem [shape: f32[512,1], index: 2, kind: input, shape index: {}]   ;;  %s4603_s3 = inlined_call_operand.vmem [shape: f32[512,256], index: 3, kind: input, shape index: {}]   ;;  %s4604_s4 = inlined_call_operand.vmem [shape: f32[512,1], index: 4, kind: input, shape index: {}]   ;;  %s4605_s5 = inlined_call_operand.vmem [shape: f32[16,256], index: 5, kind: input, shape index: {}]   ;;  %s4606_s6 = inlined_call_operand.vmem [shape: f32[16,1], index: 6, kind: input, shape index: {}]   ;;  %s4607_s7 = inlined_call_operand.vmem [shape: f32[32,8], index: 7, kind: input, shape index: {}]   ;;  %s4608_s8 = inlined_call_operand.vmem [shape: f32[32,1], index: 8, kind: input, shape index: {}]   ;;  %s4609_s9 = inlined_call_operand.vmem [shape: f32[8,32], index: 9, kind: input, shape index: {}]   ;;  %s4610_s10 = inlined_call_operand.vmem [shape: f32[8,1], index: 10, kind: input, shape index: {}]   ;;  %s4611_s11 = inlined_call_operand.hbm [shape: f32[8,128], index: 11, kind: output, shape index: {}]  }
   0x1   :  { %v143_v0 = vld [vmem:[%s4602_s2 + $0x100] sm:$0xff]  ;;  %2812 = vset.pattern.permute.xlu1 %v2837_v3  ;;  %2811 = vset.pattern.permute.xlu0 %v2837_v3  ;;  %v40_v4 = vld [vmem:[%s4600_s0 + $0x8] sm:$0xff]  ;;  %v41_v6 = vld [vmem:[%s4600_s0 + $0x10] sm:$0xff] }
   0x2   :  { %v111_v1 = vld [vmem:[%s4602_s2] sm:$0xff]  ;;  %337 = vperm.xlu1 %2812, %v143_v0   ;;  %v42_v7 = vld [vmem:[%s4600_s0 + $0x18] sm:$0xff]  ;;  %v144_v8 = vld [vmem:[%s4602_s2 + $0x108] sm:$0xff] }
   0x3   :  { %v39_v2 = vld [vmem:[%s4600_s0] sm:$0xff]  ;;  %177 = vperm.xlu0 %2811, %v111_v1   ;;  %v112_v9 = vld [vmem:[%s4602_s2 + $0x8] sm:$0xff]  ;;  %v2676_v10 = vpack.c.bf16 %v42_v7, %v41_v6  ;;  %v114_v14 = vld [vmem:[%s4602_s2 + $0x18] sm:$0xff] }
   0x4   :  { %v2672_v5 = vpack.c.bf16 %v40_v4, %v39_v2  ;;  %v43_v11 = vld [vmem:[%s4600_s0 + $0x20] sm:$0xff]  ;;  %v44_v12 = vld [vmem:[%s4600_s0 + $0x28] sm:$0xff]  ;;  %v113_v15 = vld [vmem:[%s4602_s2 + $0x10] sm:$0xff] }
   0x5   :  { %v47_v13 = vld [vmem:[%s4601_s1] sm:$0xff]  ;;  %v2680_v16 = vpack.c.bf16 %v44_v12, %v43_v11  ;;  %v45_v17 = vld [vmem:[%s4600_s0 + $0x30] sm:$0xff]  ;;  %v46_v18 = vld [vmem:[%s4600_s0 + $0x38] sm:$0xff] }
   0x6   :  { %2673 = vmatprep.subr.bf16.mxu0 %v2672_v5  ;;  %342 = vperm.xlu1 %2812, %v144_v8   ;;  %v146_v19 = vld [vmem:[%s4602_s2 + $0x118] sm:$0xff]  ;;  %v145_v20 = vld [vmem:[%s4602_s2 + $0x110] sm:$0xff]  ;;  %v2684_v21 = vpack.c.bf16 %v46_v18, %v45_v17  ;;  %v116_v22 = vld [vmem:[%s4602_s2 + $0x28] sm:$0xff] }
   0x7   :  { %2675 = vmatpush3.bf16.msra.mxu0 %v2672_v5  ;;  %182 = vperm.xlu0 %2811, %v112_v9   ;;  %v115_v23 = vld [vmem:[%s4602_s2 + $0x20] sm:$0xff]  ;;  %v48_v24 = vld [vmem:[%s4601_s1 + $0x8] sm:$0xff]  ;;  %v49_v25 = vld [vmem:[%s4601_s1 + $0x10] sm:$0xff] }
   0x8   :  { %2677 = vmatprep.subr.bf16.mxu0 %v2676_v10  ;;  %2557 = vmatprep.mubr.msk.f32.mxu0 %vm495_vm0, %v47_v13  ;;  %v148_v26 = vld [vmem:[%s4602_s2 + $0x128] sm:$0xff]  ;;  %v147_v27 = vld [vmem:[%s4602_s2 + $0x120] sm:$0xff]  ;;  %v50_v28 = vld [vmem:[%s4601_s1 + $0x18] sm:$0xff] }
   0x9   :  { %v51_v29 = vld [vmem:[%s4601_s1 + $0x20] sm:$0xff]  ;;  %v118_v30 = vld [vmem:[%s4602_s2 + $0x38] sm:$0xff]  ;;  %v117_v31 = vld [vmem:[%s4602_s2 + $0x30] sm:$0xff] }
   0xa   :  { %192 = vperm.xlu1 %2812, %v114_v14   ;;  %v52_v32 = vld [vmem:[%s4601_s1 + $0x28] sm:$0xff]  ;;  %v53_v33 = vld [vmem:[%s4601_s1 + $0x30] sm:$0xff]  ;;  %v150_v34 = vld [vmem:[%s4602_s2 + $0x138] sm:$0xff] }
   0xb   :  { %2679 = vmatpush3.bf16.msra.mxu0 %v2676_v10  ;;  %187 = vperm.xlu0 %2811, %v113_v15   ;;  %v149_v35 = vld [vmem:[%s4602_s2 + $0x130] sm:$0xff]  ;;  %v54_v36 = vld [vmem:[%s4601_s1 + $0x38] sm:$0xff]  ;;  %v55_v37 = vld [vmem:[%s4601_s1 + $0x40] sm:$0xff] }
   0xc   :  { %2681 = vmatprep.subr.bf16.mxu0 %v2680_v16  ;;  %v120_v38 = vld [vmem:[%s4602_s2 + $0x48] sm:$0xff]  ;;  %v119_v39 = vld [vmem:[%s4602_s2 + $0x40] sm:$0xff]  ;;  %v57_v41 = vld [vmem:[%s4601_s1 + $0x50] sm:$0xff] }
   0xd   :  { %v56_v40 = vld [vmem:[%s4601_s1 + $0x48] sm:$0xff]  ;;  %v151_v43 = vld [vmem:[%s4602_s2 + $0x140] sm:$0xff]  ;;  %v58_v44 = vld [vmem:[%s4601_s1 + $0x58] sm:$0xff] }
   0xe   :  { %352 = vperm.xlu1 %2812, %v146_v19   ;;  %v152_v42 = vld [vmem:[%s4602_s2 + $0x148] sm:$0xff]  ;;  %v59_v45 = vld [vmem:[%s4601_s1 + $0x60] sm:$0xff]  ;;  %v122_v46 = vld [vmem:[%s4602_s2 + $0x58] sm:$0xff] }
   0xf   :  { %2683 = vmatpush3.bf16.msra.mxu0 %v2680_v16  ;;  %347 = vperm.xlu0 %2811, %v145_v20   ;;  %v121_v47 = vld [vmem:[%s4602_s2 + $0x50] sm:$0xff]  ;;  %v60_v48 = vld [vmem:[%s4601_s1 + $0x68] sm:$0xff]  ;;  %v154_v50 = vld [vmem:[%s4602_s2 + $0x158] sm:$0xff] }
  0x10   :  { %2685 = vmatprep.subr.bf16.mxu0 %v2684_v21  ;;  %v61_v49 = vld [vmem:[%s4601_s1 + $0x70] sm:$0xff]  ;;  %v62_v52 = vld [vmem:[%s4601_s1 + $0x78] sm:$0xff]  ;;  %v63_v53 = vld [vmem:[%s4601_s1 + $0x80] sm:$0xff] }
  0x11   :  { %v153_v51 = vld [vmem:[%s4602_s2 + $0x150] sm:$0xff]  ;;  %v124_v54 = vld [vmem:[%s4602_s2 + $0x68] sm:$0xff]  ;;  %v123_v55 = vld [vmem:[%s4602_s2 + $0x60] sm:$0xff] }
  0x12   :  { %202 = vperm.xlu1 %2812, %v116_v22   ;;  %v64_v56 = vld [vmem:[%s4601_s1 + $0x88] sm:$0xff]  ;;  %v65_v57 = vld [vmem:[%s4601_s1 + $0x90] sm:$0xff]  ;;  %v155_v59 = vld [vmem:[%s4602_s2 + $0x160] sm:$0xff] }
  0x13   :  { %2687 = vmatpush3.bf16.msra.mxu0 %v2684_v21  ;;  %197 = vperm.xlu0 %2811, %v115_v23   ;;  %v156_v58 = vld [vmem:[%s4602_s2 + $0x168] sm:$0xff]  ;;  %v66_v60 = vld [vmem:[%s4601_s1 + $0x98] sm:$0xff]  ;;  %v67_v61 = vld [vmem:[%s4601_s1 + $0xa0] sm:$0xff] }
  0x16   :  { %2558 = vmatmul.mubr.msk.f32.vlgmr.msra.gmra.mrb[0].mxu0 %vm495_vm0, %v48_v24  ;;  %362 = vperm.xlu1 %2812, %v148_v26  }
  0x17   :  { %2560 = vmatprep.mubr.msk.f32.mxu0 %vm495_vm0, %v49_v25  ;;  %357 = vperm.xlu0 %2811, %v147_v27  }
  0x1a   :  { %2561 = vmatmul.mubr.msk.f32.gmra.mrb[2].mxu0 %vm495_vm0, %v50_v28  ;;  %212 = vperm.xlu1 %2812, %v118_v30  }
  0x1b   :  { %2563 = vmatprep.mubr.msk.f32.mxu0 %vm495_vm0, %v51_v29  ;;  %207 = vperm.xlu0 %2811, %v117_v31  }
  0x1e   :  { %2564 = vmatmul.mubr.msk.f32.gmra.mrb[4].mxu0 %vm495_vm0, %v52_v32  ;;  %372 = vperm.xlu1 %2812, %v150_v34  }
  0x1f   :  { %2566 = vmatprep.mubr.msk.f32.mxu0 %vm495_vm0, %v53_v33  ;;  %367 = vperm.xlu0 %2811, %v149_v35  }
  0x22   :  { %2567 = vmatmul.mubr.msk.f32.gmra.mrb[6].mxu0 %vm495_vm0, %v54_v36  ;;  %222 = vperm.xlu1 %2812, %v120_v38  }
  0x23   :  { %2569 = vmatprep.mubr.msk.f32.mxu0 %vm495_vm0, %v55_v37  ;;  %217 = vperm.xlu0 %2811, %v119_v39  }
  0x26   :  { %2570 = vmatmul.mubr.msk.f32.gmra.mrb[8].mxu0 %vm495_vm0, %v56_v40  ;;  %382 = vperm.xlu1 %2812, %v152_v42  }
  0x27   :  { %2572 = vmatprep.mubr.msk.f32.mxu0 %vm495_vm0, %v57_v41  ;;  %377 = vperm.xlu0 %2811, %v151_v43  }
  0x2a   :  { %2573 = vmatmul.mubr.msk.f32.gmra.mrb[10].mxu0 %vm495_vm0, %v58_v44  ;;  %232 = vperm.xlu1 %2812, %v122_v46  }
  0x2b   :  { %2575 = vmatprep.mubr.msk.f32.mxu0 %vm495_vm0, %v59_v45  ;;  %227 = vperm.xlu0 %2811, %v121_v47  }
  0x2e   :  { %2576 = vmatmul.mubr.msk.f32.gmra.mrb[12].mxu0 %vm495_vm0, %v60_v48  ;;  %392 = vperm.xlu1 %2812, %v154_v50  }
  0x2f   :  { %2578 = vmatprep.mubr.msk.f32.mxu0 %vm495_vm0, %v61_v49  ;;  %387 = vperm.xlu0 %2811, %v153_v51  }
  0x32   :  { %2579 = vmatmul.mubr.msk.f32.gmra.mrb[14].mxu0 %vm495_vm0, %v62_v52  ;;  %242 = vperm.xlu1 %2812, %v124_v54  }
  0x33   :  { %2581 = vmatprep.mubr.msk.f32.mxu0 %vm495_vm0, %v63_v53  ;;  %237 = vperm.xlu0 %2811, %v123_v55  }
  0x36   :  { %2582 = vmatmul.mubr.msk.f32.gmra.mrb[16].mxu0 %vm495_vm0, %v64_v56  ;;  %402 = vperm.xlu1 %2812, %v156_v58  }
  0x37   :  { %2584 = vmatprep.mubr.msk.f32.mxu0 %vm495_vm0, %v65_v57  ;;  %397 = vperm.xlu0 %2811, %v155_v59  }
  0x38   :  { %16 = vsyncpa [#allocation3], 0  ;;  %v126_v62 = vld [vmem:[%s4602_s2 + $0x78] sm:$0xff]  ;;  %v125_v63 = vld [vmem:[%s4602_s2 + $0x70] sm:$0xff]  ;;  %vm2154_vm1 = vcmask 64512   ;;  %vm2839_vm2 = vmmov 0  }
  0x39   :  { %v68_v0 = vld [vmem:[%s4601_s1 + $0xa8] sm:$0xff]  ;;  %v69_v1 = vld [vmem:[%s4601_s1 + $0xb0] sm:$0xff]  ;;  %v158_v2 = vld [vmem:[%s4602_s2 + $0x178] sm:$0xff]  ;;  %vm2263_vm3 = vcmask 261120   ;;  %s2841_s25 = smov [#allocation2]  }
  0x3a   :  { %2585 = vmatmul.mubr.msk.f32.gmra.mrb[18].mxu0 %vm495_vm0, %v66_v60  ;;  %252 = vperm.xlu1 %2812, %v126_v62   ;;  %v157_v3 = vld [vmem:[%s4602_s2 + $0x170] sm:$0xff]  ;;  %v70_v4 = vld [vmem:[%s4601_s1 + $0xb8] sm:$0xff]  ;;  %v71_v5 = vld [vmem:[%s4601_s1 + $0xc0] sm:$0xff]  ;;  %s2344_s26 = sshll.u32 %s2841_s25, 4  ;;  %s2345_s26 = int_to_ptr.vmem [resolvable:$true] %s2344_s26 }
  0x3b   :  { %2587 = vmatprep.mubr.msk.f32.mxu0 %vm495_vm0, %v67_v61  ;;  %247 = vperm.xlu0 %2811, %v125_v63   ;;  %v128_v6 = vld [vmem:[%s4602_s2 + $0x88] sm:$0xff]  ;;  %v127_v7 = vld [vmem:[%s4602_s2 + $0x80] sm:$0xff]  ;;  %v73_v9 = vld [vmem:[%s4601_s1 + $0xd0] sm:$0xff]  ;;  %s2813_s27 = scalar_lea.vmem %s2345_s26, 128  ;;  %p2818_p1 = scmp.lt.s32.totalorder %s2345_s26, %s2345_s26 }
  0x3c   :  { %v72_v8 = vld [vmem:[%s4601_s1 + $0xc8] sm:$0xff]  ;;  %v159_v11 = vld [vmem:[%s4602_s2 + $0x180] sm:$0xff]  ;;  %v74_v12 = vld [vmem:[%s4601_s1 + $0xd8] sm:$0xff]  ;;  %p2814_p0 = scmp.ne.s32.totalorder %s2345_s26, %s2813_s27  ;;  %p2819_p2 = scmp.lt.s32.totalorder %s2813_s27, %s2813_s27 }
  0x3d   :  { %v160_v10 = vld [vmem:[%s4602_s2 + $0x188] sm:$0xff]  ;;  %v75_v13 = vld [vmem:[%s4601_s1 + $0xe0] sm:$0xff]  ;;  %v130_v14 = vld [vmem:[%s4602_s2 + $0x98] sm:$0xff] }
  0x3e   :  { %2588 = vmatmul.mubr.msk.f32.gmra.mrb[20].mxu0 %vm495_vm0, %v68_v0  ;;  %412 = vperm.xlu1 %2812, %v158_v2   ;;  %v129_v15 = vld [vmem:[%s4602_s2 + $0x90] sm:$0xff]  ;;  %v76_v16 = vld [vmem:[%s4601_s1 + $0xe8] sm:$0xff]  ;;  %v162_v18 = vld [vmem:[%s4602_s2 + $0x198] sm:$0xff]  ;;  %p2820_p3 = por %p2819_p2, %p2818_p1 }
  0x3f   :  { %2590 = vmatprep.mubr.msk.f32.mxu0 %vm495_vm0, %v69_v1  ;;  %407 = vperm.xlu0 %2811, %v157_v3   ;;  %v77_v17 = vld [vmem:[%s4601_s1 + $0xf0] sm:$0xff]  ;;  %v78_v20 = vld [vmem:[%s4601_s1 + $0xf8] sm:$0xff]  ;;  %v79_v21 = vld [vmem:[%s4601_s1 + $0x100] sm:$0xff] }
  0x40   :  { %v161_v19 = vld [vmem:[%s4602_s2 + $0x190] sm:$0xff]  ;;  %v132_v22 = vld [vmem:[%s4602_s2 + $0xa8] sm:$0xff]  ;;  %v131_v23 = vld [vmem:[%s4602_s2 + $0xa0] sm:$0xff]  ;;  %p2821_p4 = pnand %p2820_p3, %p2814_p0 }
  0x41   :  { %v80_v24 = vld [vmem:[%s4601_s1 + $0x108] sm:$0xff]  ;;  %v81_v25 = vld [vmem:[%s4601_s1 + $0x110] sm:$0xff]  ;;  %v163_v27 = vld [vmem:[%s4602_s2 + $0x1a0] sm:$0xff] }
  0x42   :  { %2591 = vmatmul.mubr.msk.f32.gmra.mrb[22].mxu0 %vm495_vm0, %v70_v4  ;;  %262 = vperm.xlu1 %2812, %v128_v6   ;;  %v164_v26 = vld [vmem:[%s4602_s2 + $0x1a8] sm:$0xff]  ;;  %v82_v28 = vld [vmem:[%s4601_s1 + $0x118] sm:$0xff]  ;;  %v83_v29 = vld [vmem:[%s4601_s1 + $0x120] sm:$0xff] }
  0x43   :  { %2593 = vmatprep.mubr.msk.f32.mxu0 %vm495_vm0, %v71_v5  ;;  %257 = vperm.xlu0 %2811, %v127_v7   ;;  %v134_v30 = vld [vmem:[%s4602_s2 + $0xb8] sm:$0xff]  ;;  %v133_v31 = vld [vmem:[%s4602_s2 + $0xb0] sm:$0xff]  ;;  %v84_v32 = vld [vmem:[%s4601_s1 + $0x128] sm:$0xff] }
  0x44   :  { %v85_v33 = vld [vmem:[%s4601_s1 + $0x130] sm:$0xff]  ;;  %v166_v34 = vld [vmem:[%s4602_s2 + $0x1b8] sm:$0xff]  ;;  %v87_v37 = vld [vmem:[%s4601_s1 + $0x140] sm:$0xff] }
  0x45   :  { %v165_v35 = vld [vmem:[%s4602_s2 + $0x1b0] sm:$0xff]  ;;  %v86_v36 = vld [vmem:[%s4601_s1 + $0x138] sm:$0xff]  ;;  %v136_v38 = vld [vmem:[%s4602_s2 + $0xc8] sm:$0xff] }
  0x46   :  { %2594 = vmatmul.mubr.msk.f32.gmra.mrb[24].mxu0 %vm495_vm0, %v72_v8  ;;  %422 = vperm.xlu1 %2812, %v160_v10   ;;  %v135_v39 = vld [vmem:[%s4602_s2 + $0xc0] sm:$0xff]  ;;  %v88_v40 = vld [vmem:[%s4601_s1 + $0x148] sm:$0xff]  ;;  %v89_v41 = vld [vmem:[%s4601_s1 + $0x150] sm:$0xff] }
  0x47   :  { %2596 = vmatprep.mubr.msk.f32.mxu0 %vm495_vm0, %v73_v9  ;;  %417 = vperm.xlu0 %2811, %v159_v11   ;;  %v168_v42 = vld [vmem:[%s4602_s2 + $0x1c8] sm:$0xff]  ;;  %v167_v43 = vld [vmem:[%s4602_s2 + $0x1c0] sm:$0xff]  ;;  %v90_v44 = vld [vmem:[%s4601_s1 + $0x158] sm:$0xff] }
  0x48   :  { %v91_v45 = vld [vmem:[%s4601_s1 + $0x160] sm:$0xff]  ;;  %v138_v46 = vld [vmem:[%s4602_s2 + $0xd8] sm:$0xff]  ;;  %v137_v47 = vld [vmem:[%s4602_s2 + $0xd0] sm:$0xff] }
  0x49   :  { %v92_v48 = vld [vmem:[%s4601_s1 + $0x168] sm:$0xff]  ;;  %v93_v49 = vld [vmem:[%s4601_s1 + $0x170] sm:$0xff]  ;;  %v170_v50 = vld [vmem:[%s4602_s2 + $0x1d8] sm:$0xff] }
  0x4a   :  { %2597 = vmatmul.mubr.msk.f32.gmra.mrb[26].mxu0 %vm495_vm0, %v74_v12  ;;  %272 = vperm.xlu1 %2812, %v130_v14   ;;  %v169_v51 = vld [vmem:[%s4602_s2 + $0x1d0] sm:$0xff]  ;;  %v94_v52 = vld [vmem:[%s4601_s1 + $0x178] sm:$0xff]  ;;  %v95_v53 = vld [vmem:[%s4601_s1 + $0x180] sm:$0xff] }
  0x4b   :  { %2599 = vmatprep.mubr.msk.f32.mxu0 %vm495_vm0, %v75_v13  ;;  %267 = vperm.xlu0 %2811, %v129_v15   ;;  %v140_v54 = vld [vmem:[%s4602_s2 + $0xe8] sm:$0xff]  ;;  %v139_v55 = vld [vmem:[%s4602_s2 + $0xe0] sm:$0xff]  ;;  %v97_v57 = vld [vmem:[%s4601_s1 + $0x190] sm:$0xff] }
  0x4c   :  { %v96_v56 = vld [vmem:[%s4601_s1 + $0x188] sm:$0xff]  ;;  %v171_v59 = vld [vmem:[%s4602_s2 + $0x1e0] sm:$0xff]  ;;  %v98_v60 = vld [vmem:[%s4601_s1 + $0x198] sm:$0xff] }
  0x4d   :  { %v172_v58 = vld [vmem:[%s4602_s2 + $0x1e8] sm:$0xff]  ;;  %v99_v61 = vld [vmem:[%s4601_s1 + $0x1a0] sm:$0xff]  ;;  %v142_v62 = vld [vmem:[%s4602_s2 + $0xf8] sm:$0xff] }
  0x4e   :  { %2600 = vmatmul.mubr.msk.f32.gmra.mrb[28].mxu0 %vm495_vm0, %v76_v16  ;;  %432 = vperm.xlu1 %2812, %v162_v18   ;;  %v141_v63 = vld [vmem:[%s4602_s2 + $0xf0] sm:$0xff]  ;;  %v100_v0 = vld [vmem:[%s4601_s1 + $0x1a8] sm:$0xff]  ;;  %v174_v2 = vld [vmem:[%s4602_s2 + $0x1f8] sm:$0xff] }
  0x4f   :  { %2602 = vmatprep.mubr.msk.f32.mxu0 %vm495_vm0, %v77_v17  ;;  %427 = vperm.xlu0 %2811, %v161_v19   ;;  %v101_v1 = vld [vmem:[%s4601_s1 + $0x1b0] sm:$0xff]  ;;  %v102_v4 = vld [vmem:[%s4601_s1 + $0x1b8] sm:$0xff]  ;;  %v103_v5 = vld [vmem:[%s4601_s1 + $0x1c0] sm:$0xff] }
  0x50   :  { %v173_v3 = vld [vmem:[%s4602_s2 + $0x1f0] sm:$0xff]  ;;  %v1250_v6 = vld [vmem:[%s4604_s4 + $0x88] sm:$0xff]  ;;  %v1249_v7 = vld [vmem:[%s4604_s4 + $0x80] sm:$0xff] }
  0x51   :  { %v104_v8 = vld [vmem:[%s4601_s1 + $0x1c8] sm:$0xff]  ;;  %v105_v9 = vld [vmem:[%s4601_s1 + $0x1d0] sm:$0xff]  ;;  %v1281_v11 = vld [vmem:[%s4604_s4 + $0x180] sm:$0xff] }
  0x52   :  { %2603 = vmatmul.mubr.msk.f32.gmra.mrb[30].mxu0 %vm495_vm0, %v78_v20  ;;  %282 = vperm.xlu1 %2812, %v132_v22   ;;  %v1282_v10 = vld [vmem:[%s4604_s4 + $0x188] sm:$0xff]  ;;  %v106_v12 = vld [vmem:[%s4601_s1 + $0x1d8] sm:$0xff]  ;;  %v107_v13 = vld [vmem:[%s4601_s1 + $0x1e0] sm:$0xff] }
  0x53   :  { %2605 = vmatprep.mubr.msk.f32.mxu0 %vm495_vm0, %v79_v21  ;;  %277 = vperm.xlu0 %2811, %v131_v23   ;;  %v1234_v14 = vld [vmem:[%s4604_s4 + $0x8] sm:$0xff]  ;;  %v1233_v15 = vld [vmem:[%s4604_s4] sm:$0xff]  ;;  %v109_v17 = vld [vmem:[%s4601_s1 + $0x1f0] sm:$0xff] }
  0x54   :  { %v108_v16 = vld [vmem:[%s4601_s1 + $0x1e8] sm:$0xff]  ;;  %v1265_v19 = vld [vmem:[%s4604_s4 + $0x100] sm:$0xff]  ;;  %v110_v20 = vld [vmem:[%s4601_s1 + $0x1f8] sm:$0xff] }
  0x55   :  { %v1266_v18 = vld [vmem:[%s4604_s4 + $0x108] sm:$0xff]  ;;  %v1252_v21 = vld [vmem:[%s4604_s4 + $0x98] sm:$0xff]  ;;  %v1251_v22 = vld [vmem:[%s4604_s4 + $0x90] sm:$0xff] }
  0x56   :  { %2606 = vmatmul.mubr.msk.f32.gmra.mrb[32].mxu0 %vm495_vm0, %v80_v24  ;;  %442 = vperm.xlu1 %2812, %v164_v26   ;;  %v1284_v23 = vld [vmem:[%s4604_s4 + $0x198] sm:$0xff]  ;;  %v1283_v24 = vld [vmem:[%s4604_s4 + $0x190] sm:$0xff] }
  0x57   :  { %2608 = vmatprep.mubr.msk.f32.mxu0 %vm495_vm0, %v81_v25  ;;  %437 = vperm.xlu0 %2811, %v163_v27   ;;  %v1236_v25 = vld [vmem:[%s4604_s4 + $0x18] sm:$0xff]  ;;  %v1235_v26 = vld [vmem:[%s4604_s4 + $0x10] sm:$0xff] }
  0x58   :  { %v1268_v27 = vld [vmem:[%s4604_s4 + $0x118] sm:$0xff] }
  0x5a   :  { %2609 = vmatmul.mubr.msk.f32.gmra.mrb[34].mxu0 %vm495_vm0, %v82_v28  ;;  %292 = vperm.xlu1 %2812, %v134_v30   ;;  %v1267_v28 = vld [vmem:[%s4604_s4 + $0x110] sm:$0xff]  ;;  %v1253_v30 = vld [vmem:[%s4604_s4 + $0xa0] sm:$0xff] }
  0x5b   :  { %2611 = vmatprep.mubr.msk.f32.mxu0 %vm495_vm0, %v83_v29  ;;  %287 = vperm.xlu0 %2811, %v133_v31   ;;  %v1254_v29 = vld [vmem:[%s4604_s4 + $0xa8] sm:$0xff] }
  0x5e   :  { %2612 = vmatmul.mubr.msk.f32.gmra.mrb[36].mxu0 %vm495_vm0, %v84_v32  ;;  %452 = vperm.xlu1 %2812, %v166_v34   ;;  %v1286_v32 = vld [vmem:[%s4604_s4 + $0x1a8] sm:$0xff] }
  0x5f   :  { %2614 = vmatprep.mubr.msk.f32.mxu0 %vm495_vm0, %v85_v33  ;;  %447 = vperm.xlu0 %2811, %v165_v35   ;;  %v1285_v33 = vld [vmem:[%s4604_s4 + $0x1a0] sm:$0xff]  ;;  %v1238_v35 = vld [vmem:[%s4604_s4 + $0x28] sm:$0xff] }
  0x62   :  { %2615 = vmatmul.mubr.msk.f32.gmra.mrb[38].mxu0 %vm495_vm0, %v86_v36  ;;  %302 = vperm.xlu1 %2812, %v136_v38   ;;  %v1237_v36 = vld [vmem:[%s4604_s4 + $0x20] sm:$0xff] }
  0x63   :  { %2617 = vmatprep.mubr.msk.f32.mxu0 %vm495_vm0, %v87_v37  ;;  %297 = vperm.xlu0 %2811, %v135_v39   ;;  %v1270_v39 = vld [vmem:[%s4604_s4 + $0x128] sm:$0xff] }
  0x66   :  { %2618 = vmatmul.mubr.msk.f32.gmra.mrb[40].mxu0 %vm495_vm0, %v88_v40  ;;  %462 = vperm.xlu1 %2812, %v168_v42   ;;  %v1269_v40 = vld [vmem:[%s4604_s4 + $0x120] sm:$0xff]  ;;  %v1256_v42 = vld [vmem:[%s4604_s4 + $0xb8] sm:$0xff] }
  0x67   :  { %2620 = vmatprep.mubr.msk.f32.mxu0 %vm495_vm0, %v89_v41  ;;  %457 = vperm.xlu0 %2811, %v167_v43   ;;  %v1255_v43 = vld [vmem:[%s4604_s4 + $0xb0] sm:$0xff] }
  0x6a   :  { %2621 = vmatmul.mubr.msk.f32.gmra.mrb[42].mxu0 %vm495_vm0, %v90_v44  ;;  %312 = vperm.xlu1 %2812, %v138_v46   ;;  %v4612_v44 = vmov 0.0|0.0   ;;  %v1288_v46 = vld [vmem:[%s4604_s4 + $0x1b8] sm:$0xff] }
  0x6b   :  { %2623 = vmatprep.mubr.msk.f32.mxu0 %vm495_vm0, %v91_v45  ;;  %307 = vperm.xlu0 %2811, %v137_v47   ;;  %v1287_v47 = vld [vmem:[%s4604_s4 + $0x1b0] sm:$0xff] }
  0x6c   :  { %2774 = vmatprep.subr.bf16.mxu1 %v4612_v44  ;;  %2688 = vmatprep.subr.bf16.mxu0 %v4612_v44 }
  0x6e   :  { %2624 = vmatmul.mubr.msk.f32.gmra.mrb[44].mxu0 %vm495_vm0, %v92_v48  ;;  %472 = vperm.xlu1 %2812, %v170_v50   ;;  %v1240_v50 = vld [vmem:[%s4604_s4 + $0x38] sm:$0xff] }
  0x6f   :  { %2626 = vmatprep.mubr.msk.f32.mxu0 %vm495_vm0, %v93_v49  ;;  %467 = vperm.xlu0 %2811, %v169_v51   ;;  %v1239_v51 = vld [vmem:[%s4604_s4 + $0x30] sm:$0xff] }
  0x72   :  { %2627 = vmatmul.mubr.msk.f32.gmra.mrb[46].mxu0 %vm495_vm0, %v94_v52  ;;  %322 = vperm.xlu1 %2812, %v140_v54   ;;  %v1271_v54 = vld [vmem:[%s4604_s4 + $0x130] sm:$0xff] }
  0x73   :  { %2629 = vmatprep.mubr.msk.f32.mxu0 %vm495_vm0, %v95_v53  ;;  %317 = vperm.xlu0 %2811, %v139_v55   ;;  %v1272_v53 = vld [vmem:[%s4604_s4 + $0x138] sm:$0xff] }
  0x76   :  { %2630 = vmatmul.mubr.msk.f32.gmra.mrb[48].mxu0 %vm495_vm0, %v96_v56  ;;  %482 = vperm.xlu1 %2812, %v172_v58   ;;  %v1258_v56 = vld [vmem:[%s4604_s4 + $0xc8] sm:$0xff] }
  0x77   :  { %2632 = vmatprep.mubr.msk.f32.mxu0 %vm495_vm0, %v97_v57  ;;  %477 = vperm.xlu0 %2811, %v171_v59   ;;  %v1257_v57 = vld [vmem:[%s4604_s4 + $0xc0] sm:$0xff] }
  0x7a   :  { %2633 = vmatmul.mubr.msk.f32.gmra.mrb[50].mxu0 %vm495_vm0, %v98_v60  ;;  %332 = vperm.xlu1 %2812, %v142_v62   ;;  %v1290_v60 = vld [vmem:[%s4604_s4 + $0x1c8] sm:$0xff] }
  0x7b   :  { %2635 = vmatprep.mubr.msk.f32.mxu0 %vm495_vm0, %v99_v61  ;;  %327 = vperm.xlu0 %2811, %v141_v63   ;;  %v1289_v61 = vld [vmem:[%s4604_s4 + $0x1c0] sm:$0xff]  ;;  %v1242_v63 = vld [vmem:[%s4604_s4 + $0x48] sm:$0xff] }
  0x7e   :  { %2636 = vmatmul.mubr.msk.f32.gmra.mrb[52].mxu0 %vm495_vm0, %v100_v0  ;;  %492 = vperm.xlu1 %2812, %v174_v2   ;;  %v1241_v0 = vld [vmem:[%s4604_s4 + $0x40] sm:$0xff]  ;;  %v1274_v2 = vld [vmem:[%s4604_s4 + $0x148] sm:$0xff] }
  0x7f   :  { %2638 = vmatprep.mubr.msk.f32.mxu0 %vm495_vm0, %v101_v1  ;;  %487 = vperm.xlu0 %2811, %v173_v3   ;;  %v1273_v3 = vld [vmem:[%s4604_s4 + $0x140] sm:$0xff] }
  0x81   :  { %v3436_v34 = vpop.permute.xlu1 %337 }
  0x82   :  { %2639 = vmatmul.mubr.msk.f32.gmra.mrb[54].mxu0 %vm495_vm0, %v102_v4  ;;  %1384 = vperm.xlu1 %2812, %v1250_v6   ;;  %v3428_v31 = vpop.permute.xlu0 %177  ;;  %v1260_v6 = vld [vmem:[%s4604_s4 + $0xd8] sm:$0xff] }
  0x83   :  { %2641 = vmatprep.mubr.msk.f32.mxu0 %vm495_vm0, %v103_v5  ;;  %1379 = vperm.xlu0 %2811, %v1249_v7   ;;  %v1259_v7 = vld [vmem:[%s4604_s4 + $0xd0] sm:$0xff] }
  0x85   :  { %v3446_v38 = vpop.permute.xlu1 %342 }
  0x86   :  { %2642 = vmatmul.mubr.msk.f32.gmra.mrb[56].mxu0 %vm495_vm0, %v104_v8  ;;  %1544 = vperm.xlu1 %2812, %v1282_v10   ;;  %v3444_v37 = vpop.permute.xlu0 %182  ;;  %v1291_v10 = vld [vmem:[%s4604_s4 + $0x1d0] sm:$0xff] }
  0x87   :  { %2644 = vmatprep.mubr.msk.f32.mxu0 %vm495_vm0, %v105_v9  ;;  %1539 = vperm.xlu0 %2811, %v1281_v11   ;;  %v1292_v9 = vld [vmem:[%s4604_s4 + $0x1d8] sm:$0xff] }
  0x89   :  { %v3464_v45 = vpop.permute.xlu1 %192 }
  0x8a   :  { %2645 = vmatmul.mubr.msk.f32.gmra.mrb[58].mxu0 %vm495_vm0, %v106_v12  ;;  %1304 = vperm.xlu1 %2812, %v1234_v14   ;;  %v3454_v41 = vpop.permute.xlu0 %187  ;;  %v1244_v12 = vld [vmem:[%s4604_s4 + $0x58] sm:$0xff] }
  0x8b   :  { %2647 = vmatprep.mubr.msk.f32.mxu0 %vm495_vm0, %v107_v13  ;;  %1299 = vperm.xlu0 %2811, %v1233_v15   ;;  %v1243_v13 = vld [vmem:[%s4604_s4 + $0x50] sm:$0xff] }
  0x8d   :  { %v3474_v49 = vpop.permute.xlu1 %352 }
  0x8e   :  { %2648 = vmatmul.mubr.msk.f32.gmra.mrb[60].mxu0 %vm495_vm0, %v108_v16  ;;  %1464 = vperm.xlu1 %2812, %v1266_v18   ;;  %v3472_v48 = vpop.permute.xlu0 %347  ;;  %v1276_v16 = vld [vmem:[%s4604_s4 + $0x158] sm:$0xff] }
  0x8f   :  { %2650 = vmatprep.mubr.msk.f32.mxu0 %vm495_vm0, %v109_v17  ;;  %1459 = vperm.xlu0 %2811, %v1265_v19   ;;  %v1275_v17 = vld [vmem:[%s4604_s4 + $0x150] sm:$0xff]  ;;  %v1262_v19 = vld [vmem:[%s4604_s4 + $0xe8] sm:$0xff] }
  0x91   :  { %v3490_v55 = vpop.permute.xlu1 %202 }
  0x92   :  { %2651 = vmatmul.mubr.msk.f32.gmra.mrb[62].mxu0 %vm495_vm0, %v110_v20  ;;  %1394 = vperm.xlu1 %2812, %v1252_v21   ;;  %v3482_v52 = vpop.permute.xlu0 %197  ;;  %v1261_v20 = vld [vmem:[%s4604_s4 + $0xe0] sm:$0xff] }
  0x93   :  { %1389 = vperm.xlu0 %2811, %v1251_v22   ;;  %v1294_v22 = vld [vmem:[%s4604_s4 + $0x1e8] sm:$0xff] }
  0x95   :  { %v3500_v59 = vpop.permute.xlu1 %362 }
  0x96   :  { %1554 = vperm.xlu1 %2812, %v1284_v23   ;;  %v3498_v58 = vpop.permute.xlu0 %357  ;;  %v1293_v23 = vld [vmem:[%s4604_s4 + $0x1e0] sm:$0xff] }
  0x97   :  { %1549 = vperm.xlu0 %2811, %v1283_v24  }
  0x99   :  { %v3516_v1 = vpop.permute.xlu1 %212 }
  0x9a   :  { %1314 = vperm.xlu1 %2812, %v1236_v25   ;;  %v3508_v62 = vpop.permute.xlu0 %207 }
  0x9b   :  { %1309 = vperm.xlu0 %2811, %v1235_v26  }
  0x9d   :  { %v3526_v5 = vpop.permute.xlu1 %372 }
  0x9e   :  { %1474 = vperm.xlu1 %2812, %v1268_v27   ;;  %v3524_v4 = vpop.permute.xlu0 %367  ;;  %v1246_v27 = vld [vmem:[%s4604_s4 + $0x68] sm:$0xff] }
  0x9f   :  { %1469 = vperm.xlu0 %2811, %v1267_v28   ;;  %v1245_v28 = vld [vmem:[%s4604_s4 + $0x60] sm:$0xff] }
  0xa1   :  { %v3542_v11 = vpop.permute.xlu1 %222 }
  0xa2   :  { %1404 = vperm.xlu1 %2812, %v1254_v29   ;;  %v3534_v8 = vpop.permute.xlu0 %217 }
  0xa3   :  { %1399 = vperm.xlu0 %2811, %v1253_v30  }
  0xa5   :  { %v3552_v15 = vpop.permute.xlu1 %382 }
  0xa6   :  { %1564 = vperm.xlu1 %2812, %v1286_v32   ;;  %v3550_v14 = vpop.permute.xlu0 %377  ;;  %v1278_v32 = vld [vmem:[%s4604_s4 + $0x168] sm:$0xff] }
  0xa7   :  { %1559 = vperm.xlu0 %2811, %v1285_v33  }
  0xa9   :  { %v3568_v21 = vpop.permute.xlu1 %232 }
  0xaa   :  { %1324 = vperm.xlu1 %2812, %v1238_v35   ;;  %v3560_v18 = vpop.permute.xlu0 %227  ;;  %v1277_v35 = vld [vmem:[%s4604_s4 + $0x160] sm:$0xff] }
  0xab   :  { %1319 = vperm.xlu0 %2811, %v1237_v36   ;;  %v1106_v36 = vld [vmem:[%s4603_s3 + $0x8] sm:$0xff] }
  0xac   :  { %1681 = vmatprep.mubr.f32.mxu0 %v1106_v36 }
  0xad   :  { %v3578_v25 = vpop.permute.xlu1 %392 }
  0xae   :  { %1484 = vperm.xlu1 %2812, %v1270_v39   ;;  %v3576_v24 = vpop.permute.xlu0 %387  ;;  %v1144_v39 = vld [vmem:[%s4603_s3 + $0x138] sm:$0xff] }
  0xaf   :  { %1479 = vperm.xlu0 %2811, %v1269_v40   ;;  %1776 = vmatprep.mubr.f32.mxu1 %v1144_v39 }
  0xb1   :  { %v3606_v40 = vpop.permute.xlu1 %242 }
  0xb2   :  { %1414 = vperm.xlu1 %2812, %v1256_v42   ;;  %v3590_v30 = vpop.permute.xlu0 %237 }
  0xb3   :  { %1409 = vperm.xlu0 %2811, %v1255_v43  }
  0xb6   :  { %1574 = vperm.xlu1 %2812, %v1288_v46   ;;  %v1264_v46 = vld [vmem:[%s4604_s4 + $0xf8] sm:$0xff] }
  0xb7   :  { %1569 = vperm.xlu0 %2811, %v1287_v47   ;;  %v1263_v47 = vld [vmem:[%s4604_s4 + $0xf0] sm:$0xff] }
  0xba   :  { %1334 = vperm.xlu1 %2812, %v1240_v50   ;;  %v3618_v50 = vpop.permute.xlu0 %397 }
  0xbb   :  { %1329 = vperm.xlu0 %2811, %v1239_v51  }
  0xbe   :  { %1494 = vperm.xlu1 %2812, %v1272_v53   ;;  %v3622_v53 = vpop.permute.xlu1 %402 }
  0xbf   :  { %1489 = vperm.xlu0 %2811, %v1271_v54  }
  0xc2   :  { %1424 = vperm.xlu1 %2812, %v1258_v56   ;;  %v1296_v56 = vld [vmem:[%s4604_s4 + $0x1f8] sm:$0xff] }
  0xc3   :  { %1419 = vperm.xlu0 %2811, %v1257_v57   ;;  %v1295_v57 = vld [vmem:[%s4604_s4 + $0x1f0] sm:$0xff] }
  0xc6   :  { %1584 = vperm.xlu1 %2812, %v1290_v60  }
  0xc7   :  { %1579 = vperm.xlu0 %2811, %v1289_v61   ;;  %v3634_v61 = vpop.permute.xlu0 %247 }
  0xca   :  { %1344 = vperm.xlu1 %2812, %v1242_v63  }
  0xcb   :  { %1339 = vperm.xlu0 %2811, %v1241_v0   ;;  %v1248_v0 = vld [vmem:[%s4604_s4 + $0x78] sm:$0xff] }
  0xce   :  { %1504 = vperm.xlu1 %2812, %v1274_v2   ;;  %v1247_v2 = vld [vmem:[%s4604_s4 + $0x70] sm:$0xff] }
  0xcf   :  { %1499 = vperm.xlu0 %2811, %v1273_v3   ;;  %v3644_v3 = vpop.permute.xlu1 %252 }
  0xd2   :  { %1434 = vperm.xlu1 %2812, %v1260_v6  }
  0xd3   :  { %1429 = vperm.xlu0 %2811, %v1259_v7  }
  0xd6   :  { %1594 = vperm.xlu1 %2812, %v1292_v9   ;;  %v1280_v9 = vld [vmem:[%s4604_s4 + $0x178] sm:$0xff] }
  0xd7   :  { %1589 = vperm.xlu0 %2811, %v1291_v10   ;;  %v1279_v10 = vld [vmem:[%s4604_s4 + $0x170] sm:$0xff] }
  0xda   :  { %1354 = vperm.xlu1 %2812, %v1244_v12   ;;  %v3656_v12 = vpop.permute.xlu0 %407 }
  0xdb   :  { %1349 = vperm.xlu0 %2811, %v1243_v13  }
  0xde   :  { %1514 = vperm.xlu1 %2812, %v1276_v16   ;;  %v3660_v16 = vpop.permute.xlu1 %412 }
  0xdf   :  { %1509 = vperm.xlu0 %2811, %v1275_v17  }
  0xe2   :  { %1444 = vperm.xlu1 %2812, %v1262_v19   ;;  %v2039_v19 = vld [vmem:[%s4606_s6 + $0x8] sm:$0xff] }
  0xe3   :  { %1439 = vperm.xlu0 %2811, %v1261_v20   ;;  %v2038_v20 = vld [vmem:[%s4606_s6] sm:$0xff] }
  0xe6   :  { %1604 = vperm.xlu1 %2812, %v1294_v22  }
  0xe7   :  { %1599 = vperm.xlu0 %2811, %v1293_v23   ;;  %v3672_v23 = vpop.permute.xlu0 %257 }
  0xe8   :  { %4615 = vst [vmem:[#allocation5_spill] sm:$0xff] %v3672_v23 }
  0xe9   :  { %v3580_v26 = vpop.f32.mrb[0].mxu0 }
  0xea   :  { %v3588_v29 = vpop.f32.mrb[1].mxu0  ;;  %1364 = vperm.xlu1 %2812, %v1246_v27  }
  0xeb   :  { %1359 = vperm.xlu0 %2811, %v1245_v28   ;;  %v2131_v28 = vld [vmem:[%s4608_s8 + $0x8] sm:$0xff] }
  0xed   :  { %v3595_v33 = vpop.f32.mrb[2].mxu0 }
  0xee   :  { %v3608_v42 = vpop.f32.mrb[3].mxu0  ;;  %1524 = vperm.xlu1 %2812, %v1278_v32   ;;  %v2130_v32 = vld [vmem:[%s4608_s8] sm:$0xff] }
  0xef   :  { %1519 = vperm.xlu0 %2811, %v1277_v35   ;;  %v3682_v35 = vpop.permute.xlu1 %262 }
  0xf1   :  { %v3610_v43 = vpop.f32.mrb[4].mxu0 }
  0xf2   :  { %v3620_v51 = vpop.f32.mrb[5].mxu0  ;;  %1454 = vperm.xlu1 %2812, %v1264_v46   ;;  %v2133_v46 = vld [vmem:[%s4608_s8 + $0x18] sm:$0xff] }
  0xf3   :  { %1449 = vperm.xlu0 %2811, %v1263_v47   ;;  %v2132_v47 = vld [vmem:[%s4608_s8 + $0x10] sm:$0xff] }
  0xf5   :  { %v3624_v54 = vpop.f32.mrb[6].mxu0 }
  0xf6   :  { %v3632_v60 = vpop.f32.mrb[7].mxu0  ;;  %1614 = vperm.xlu1 %2812, %v1296_v56   ;;  %v3694_v56 = vpop.permute.xlu0 %417 }
  0xf7   :  { %1609 = vperm.xlu0 %2811, %v1295_v57   ;;  %4616 = vst [vmem:[#allocation6_spill] sm:$0xff] %v3694_v56 }
  0xf9   :  { %v3636_v63 = vpop.f32.mrb[8].mxu0 }
  0xfa   :  { %v3646_v6 = vpop.f32.mrb[9].mxu0  ;;  %1374 = vperm.xlu1 %2812, %v1248_v0   ;;  %v3698_v0 = vpop.permute.xlu1 %422 }
  0xfb   :  { %1369 = vperm.xlu0 %2811, %v1247_v2  }
  0xfd   :  { %v3648_v7 = vpop.f32.mrb[10].mxu0 }
  0xfe   :  { %v3658_v13 = vpop.f32.mrb[11].mxu0  ;;  %1534 = vperm.xlu1 %2812, %v1280_v9   ;;  %v2257_v9 = vld [vmem:[%s4610_s10] sm:$0xff] }
  0xff   :  { %1529 = vperm.xlu0 %2811, %v1279_v10  }
 0x101   :  { %v3662_v17 = vpop.f32.mrb[12].mxu0 }
 0x102   :  { %v3670_v22 = vpop.f32.mrb[13].mxu0  ;;  %2047 = vperm.xlu1 %2812, %v2039_v19   ;;  %v3707_v19 = vpop.permute.xlu0 %267 }
 0x103   :  { %2042 = vperm.xlu0 %2811, %v2038_v20   ;;  %4620 = vst [vmem:[#allocation10_spill] sm:$0xff] %v3707_v19 }
 0x105   :  { %v3674_v27 = vpop.f32.mrb[14].mxu0 }
 0x106   :  { %v3684_v36 = vpop.f32.mrb[15].mxu0  ;;  %2141 = vperm.xlu1 %2812, %v2131_v28   ;;  %v3727_v19 = vpop.permute.xlu0 %427 }
 0x107   :  { %2136 = vperm.xlu0 %2811, %v2130_v32   ;;  %4630 = vst [vmem:[#allocation20_spill] sm:$0xff] %v3727_v19 }
 0x109   :  { %v3686_v39 = vpop.f32.mrb[16].mxu0 }
 0x10a   :  { %v3696_v57 = vpop.f32.mrb[17].mxu0  ;;  %2151 = vperm.xlu1 %2812, %v2133_v46   ;;  %v3717_v46 = vpop.permute.xlu1 %272 }
 0x10b   :  { %4617 = vst [vmem:[#allocation7_spill] sm:$0xff] %v3696_v57  ;;  %2146 = vperm.xlu0 %2811, %v2132_v47   ;;  %4625 = vst [vmem:[#allocation15_spill] sm:$0xff] %v3717_v46 }
 0x10d   :  { %v3700_v2 = vpop.f32.mrb[18].mxu0 }
 0x10e   :  { %4618 = vst [vmem:[#allocation8_spill] sm:$0xff] %v3700_v2  ;;  %v3705_v10 = vpop.f32.mrb[19].mxu0  ;;  %v3723_v56 = vpop.permute.xlu1 %432 }
 0x10f   :  { %4619 = vst [vmem:[#allocation9_spill] sm:$0xff] %v3705_v10  ;;  %2260 = vperm.xlu0 %2811, %v2257_v9   ;;  %4628 = vst [vmem:[#allocation18_spill] sm:$0xff] %v3723_v56 }
 0x111   :  { %v3709_v20 = vpop.f32.mrb[20].mxu0 }
 0x112   :  { %4621 = vst [vmem:[#allocation11_spill] sm:$0xff] %v3709_v20  ;;  %v3711_v28 = vpop.f32.mrb[21].mxu0 }
 0x113   :  { %4622 = vst [vmem:[#allocation12_spill] sm:$0xff] %v3711_v28 }
 0x115   :  { %v3713_v32 = vpop.f32.mrb[22].mxu0 }
 0x116   :  { %4623 = vst [vmem:[#allocation13_spill] sm:$0xff] %v3713_v32  ;;  %v3715_v44 = vpop.f32.mrb[23].mxu0  ;;  %v3735_v32 = vpop.permute.xlu1 %282 }
 0x117   :  { %4624 = vst [vmem:[#allocation14_spill] sm:$0xff] %v3715_v44  ;;  %4634 = vst [vmem:[#allocation24_spill] sm:$0xff] %v3735_v32  ;;  %v3737_v44 = vpop.permute.xlu0 %277 }
 0x118   :  { %4635 = vst [vmem:[#allocation25_spill] sm:$0xff] %v3737_v44 }
 0x119   :  { %v3719_v47 = vpop.f32.mrb[24].mxu0 }
 0x11a   :  { %4626 = vst [vmem:[#allocation16_spill] sm:$0xff] %v3719_v47  ;;  %v3721_v2 = vpop.f32.mrb[25].mxu0 }
 0x11b   :  { %4627 = vst [vmem:[#allocation17_spill] sm:$0xff] %v3721_v2  ;;  %v3743_v2 = vpop.permute.xlu1 %442 }
 0x11c   :  { %4638 = vst [vmem:[#allocation28_spill] sm:$0xff] %v3743_v2 }
 0x11d   :  { %v3725_v10 = vpop.f32.mrb[26].mxu0 }
 0x11e   :  { %4629 = vst [vmem:[#allocation19_spill] sm:$0xff] %v3725_v10  ;;  %v3729_v9 = vpop.f32.mrb[27].mxu0  ;;  %v3745_v10 = vpop.permute.xlu0 %437 }
 0x11f   :  { %4631 = vst [vmem:[#allocation21_spill] sm:$0xff] %v3729_v9  ;;  %4639 = vst [vmem:[#allocation29_spill] sm:$0xff] %v3745_v10  ;;  %v760_v9 = vadd.f32 %v3580_v26, %v3444_v37  ;;  %v3756_v23 = vpop.permute.xlu1 %292  ;;  %v765_v37 = vadd.f32 %v3608_v42, %v3454_v41  ;;  %v775_v41 = vadd.f32 %v3620_v51, %v3482_v52 }
 0x120   :  { %v785_v52 = vadd.f32 %v3632_v60, %v3508_v62  ;;  %v795_v62 = vadd.f32 %v3646_v6, %v3534_v8  ;;  %v805_v8 = vadd.f32 %v3658_v13, %v3560_v18  ;;  %v815_v18 = vadd.f32 %v3670_v22, %v3590_v30 }
 0x121   :  { %v3731_v20 = vpop.f32.mrb[28].mxu0  ;;  %v825_v30 = vadd.f32 %v3684_v36, %v3634_v61  ;;  %v4641_v61 = vld [vmem:[#allocation5_spill] sm:$0xff]  ;;  %v4642_v36 = vld [vmem:[#allocation7_spill] sm:$0xff] }
 0x122   :  { %4632 = vst [vmem:[#allocation22_spill] sm:$0xff] %v3731_v20  ;;  %v3733_v28 = vpop.f32.mrb[29].mxu0 }
 0x123   :  { %4633 = vst [vmem:[#allocation23_spill] sm:$0xff] %v3733_v28  ;;  %v755_v28 = vadd.f32 %v3588_v29, %v3428_v31  ;;  %v3761_v31 = vpop.permute.xlu0 %287 }
 0x125   :  { %v3739_v46 = vpop.f32.mrb[30].mxu0 }
 0x126   :  { %4636 = vst [vmem:[#allocation26_spill] sm:$0xff] %v3739_v46  ;;  %v3741_v47 = vpop.f32.mrb[31].mxu0 }
 0x127   :  { %4637 = vst [vmem:[#allocation27_spill] sm:$0xff] %v3741_v47  ;;  %v770_v47 = vadd.f32 %v3595_v33, %v3464_v45  ;;  %v780_v45 = vadd.f32 %v3610_v43, %v3490_v55  ;;  %v3773_v55 = vpop.permute.xlu0 %447 }
 0x129   :  { %v2607_v56 = vpop.f32.mrb[32].mxu0 }
 0x12a   :  { %v920_v20 = vadd.f32 %v2607_v56, %v3446_v38  ;;  %v914_v19 = vpop.f32.mrb[33].mxu0  ;;  %v4640_v56 = vmov 0.0|0.0  }
 0x12b   :  { %v915_v44 = vadd.f32 %v914_v19, %v3436_v34 }
 0x12c   :  { %v1074_v32 = vmax.f32 %v760_v9, %v920_v20  ;;  %v3793_v9 = vpop.permute.xlu0 %297 }
 0x12d   :  { %v1073_v46 = vmax.f32 %v755_v28, %v915_v44  ;;  %v2610_v57 = vpop.f32.mrb[34].mxu0 }
 0x12e   :  { %v930_v2 = vadd.f32 %v2610_v57, %v3474_v49  ;;  %v924_v10 = vpop.f32.mrb[35].mxu0 }
 0x12f   :  { %v2689_v38 = vpack.c.bf16 %v1074_v32, %v1073_v46  ;;  %v925_v26 = vadd.f32 %v924_v10, %v3472_v48 }
 0x130   :  { %v1076_v34 = vmax.f32 %v770_v47, %v930_v2  ;;  %v3771_v2 = vpop.permute.xlu1 %452 }
 0x131   :  { %v1075_v29 = vmax.f32 %v765_v37, %v925_v26  ;;  %v2613_v44 = vpop.f32.mrb[36].mxu0  ;;  %2690 = vmatpush1.bf16.msra.mxu0 %v2689_v38  ;;  %2790 = vmatpush1.bf16.msra.mxu1 %v2689_v38 }
 0x132   :  { %v940_v49 = vadd.f32 %v2613_v44, %v3500_v59  ;;  %v934_v33 = vpop.f32.mrb[37].mxu0  ;;  %2691 = vmatprep.subr.bf16.mxu0 %v4640_v56  ;;  %2775 = vmatprep.subr.bf16.mxu1 %v4640_v56  ;;  %v790_v59 = vadd.f32 %v3624_v54, %v3516_v1  ;;  %v800_v1 = vadd.f32 %v3636_v63, %v3542_v11 }
 0x133   :  { %v2692_v48 = vpack.c.bf16 %v1076_v34, %v1075_v29  ;;  %v935_v42 = vadd.f32 %v934_v33, %v3498_v58 }
 0x134   :  { %v1078_v57 = vmax.f32 %v780_v45, %v940_v49  ;;  %v3788_v47 = vpop.permute.xlu1 %302 }
 0x135   :  { %v1077_v10 = vmax.f32 %v775_v41, %v935_v42  ;;  %v2616_v19 = vpop.f32.mrb[38].mxu0  ;;  %2693 = vmatpush1.bf16.msra.mxu0 %v2692_v48  ;;  %2791 = vmatpush1.bf16.msra.mxu1 %v2692_v48 }
 0x136   :  { %v950_v43 = vadd.f32 %v2616_v19, %v3526_v5  ;;  %v944_v20 = vpop.f32.mrb[39].mxu0  ;;  %2694 = vmatprep.subr.bf16.mxu0 %v4640_v56  ;;  %2776 = vmatprep.subr.bf16.mxu1 %v4640_v56 }
 0x137   :  { %v2695_v58 = vpack.c.bf16 %v1078_v57, %v1077_v10  ;;  %v945_v51 = vadd.f32 %v944_v20, %v3524_v4  ;;  %v4643_v20 = vld [vmem:[#allocation6_spill] sm:$0xff] }
 0x138   :  { %v1080_v28 = vmax.f32 %v790_v59, %v950_v43  ;;  %v3803_v29 = vpop.permute.xlu1 %462 }
 0x139   :  { %v1079_v32 = vmax.f32 %v785_v52, %v945_v51  ;;  %v2619_v46 = vpop.f32.mrb[40].mxu0  ;;  %2696 = vmatpush1.bf16.msra.mxu0 %v2695_v58  ;;  %2792 = vmatpush1.bf16.msra.mxu1 %v2695_v58 }
 0x13a   :  { %v960_v5 = vadd.f32 %v2619_v46, %v3552_v15  ;;  %v954_v54 = vpop.f32.mrb[41].mxu0  ;;  %2697 = vmatprep.subr.bf16.mxu0 %v4640_v56  ;;  %2777 = vmatprep.subr.bf16.mxu1 %v4640_v56  ;;  %v810_v15 = vadd.f32 %v3648_v7, %v3568_v21  ;;  %v3805_v21 = vpop.permute.xlu0 %457 }
 0x13b   :  { %v2698_v4 = vpack.c.bf16 %v1080_v28, %v1079_v32  ;;  %v955_v60 = vadd.f32 %v954_v54, %v3550_v14 }
 0x13c   :  { %v1082_v37 = vmax.f32 %v800_v1, %v960_v5  ;;  %v3820_v42 = vpop.permute.xlu1 %312  ;;  %v4646_v1 = vld [vmem:[#allocation18_spill] sm:$0xff] }
 0x13d   :  { %v1081_v38 = vmax.f32 %v795_v62, %v955_v60  ;;  %v2622_v11 = vpop.f32.mrb[42].mxu0  ;;  %2699 = vmatpush1.bf16.msra.mxu0 %v2698_v4  ;;  %2793 = vmatpush1.bf16.msra.mxu1 %v2698_v4  ;;  %v4647_v62 = vld [vmem:[#allocation10_spill] sm:$0xff]  ;;  %v4648_v4 = vld [vmem:[#allocation9_spill] sm:$0xff] }
 0x13e   :  { %v970_v63 = vadd.f32 %v2622_v11, %v3578_v25  ;;  %v964_v26 = vpop.f32.mrb[43].mxu0  ;;  %2700 = vmatprep.subr.bf16.mxu0 %v4640_v56  ;;  %2778 = vmatprep.subr.bf16.mxu1 %v4640_v56  ;;  %v820_v25 = vadd.f32 %v3662_v17, %v3606_v40  ;;  %v830_v40 = vadd.f32 %v3674_v27, %v3644_v3  ;;  %v3825_v57 = vpop.permute.xlu0 %307 }
 0x13f   :  { %v2701_v14 = vpack.c.bf16 %v1082_v37, %v1081_v38  ;;  %v965_v6 = vadd.f32 %v964_v26, %v3576_v24  ;;  %v845_v60 = vadd.f32 %v4648_v4, %v4647_v62  ;;  %v4649_v38 = vld [vmem:[#allocation20_spill] sm:$0xff] }
 0x140   :  { %v1084_v34 = vmax.f32 %v810_v15, %v970_v63  ;;  %v3835_v51 = vpop.permute.xlu1 %472 }
 0x141   :  { %v1083_v44 = vmax.f32 %v805_v8, %v965_v6  ;;  %v2625_v45 = vpop.f32.mrb[44].mxu0  ;;  %2702 = vmatpush1.bf16.msra.mxu0 %v2701_v14  ;;  %2794 = vmatpush1.bf16.msra.mxu1 %v2701_v14  ;;  %v4650_v8 = vld [vmem:[#allocation24_spill] sm:$0xff]  ;;  %v4651_v14 = vld [vmem:[#allocation11_spill] sm:$0xff] }
 0x142   :  { %v980_v7 = vadd.f32 %v2625_v45, %v3622_v53  ;;  %v974_v49 = vpop.f32.mrb[45].mxu0  ;;  %2703 = vmatprep.subr.bf16.mxu0 %v4640_v56  ;;  %2779 = vmatprep.subr.bf16.mxu1 %v4640_v56  ;;  %v860_v6 = vadd.f32 %v4651_v14, %v4650_v8 }
 0x143   :  { %v2704_v24 = vpack.c.bf16 %v1084_v34, %v1083_v44  ;;  %v975_v13 = vadd.f32 %v974_v49, %v3618_v50  ;;  %v4652_v34 = vld [vmem:[#allocation28_spill] sm:$0xff] }
 0x144   :  { %v1086_v33 = vmax.f32 %v820_v25, %v980_v7  ;;  %v323_v25 = vpop.permute.xlu1 %322  ;;  %v4653_v7 = vld [vmem:[#allocation25_spill] sm:$0xff]  ;;  %v4654_v49 = vld [vmem:[#allocation12_spill] sm:$0xff] }
 0x145   :  { %v1085_v41 = vmax.f32 %v815_v18, %v975_v13  ;;  %v2628_v48 = vpop.f32.mrb[46].mxu0  ;;  %2705 = vmatpush1.bf16.msra.mxu0 %v2704_v24  ;;  %2795 = vmatpush1.bf16.msra.mxu1 %v2704_v24  ;;  %v855_v18 = vadd.f32 %v4654_v49, %v4653_v7  ;;  %v4655_v13 = vld [vmem:[#allocation29_spill] sm:$0xff]  ;;  %v4665_v49 = vld [vmem:[#allocation27_spill] sm:$0xff] }
 0x146   :  { %v990_v53 = vadd.f32 %v2628_v48, %v3660_v16  ;;  %v984_v17 = vpop.f32.mrb[47].mxu0  ;;  %2706 = vmatprep.subr.bf16.mxu0 %v4640_v56  ;;  %2780 = vmatprep.subr.bf16.mxu1 %v4640_v56  ;;  %v840_v16 = vadd.f32 %v3686_v39, %v3682_v35  ;;  %v3837_v35 = vpop.permute.xlu0 %467  ;;  %v4644_v39 = vld [vmem:[#allocation15_spill] sm:$0xff] }
 0x147   :  { %v2707_v50 = vpack.c.bf16 %v1086_v33, %v1085_v41  ;;  %v985_v22 = vadd.f32 %v984_v17, %v3656_v12  ;;  %v835_v12 = vadd.f32 %v4642_v36, %v4641_v61  ;;  %v4656_v17 = vld [vmem:[#allocation13_spill] sm:$0xff] }
 0x148   :  { %v1088_v10 = vmax.f32 %v830_v40, %v990_v53 }
 0x149   :  { %v1087_v19 = vmax.f32 %v825_v30, %v985_v22  ;;  %v2631_v3 = vpop.f32.mrb[48].mxu0  ;;  %2708 = vmatpush1.bf16.msra.mxu0 %v2707_v50  ;;  %2796 = vmatpush1.bf16.msra.mxu1 %v2707_v50  ;;  %v870_v30 = vadd.f32 %v4656_v17, %v3756_v23  ;;  %v1108_v17 = vld [vmem:[%s4603_s3 + $0x18] sm:$0xff] }
 0x14a   :  { %v1000_v27 = vadd.f32 %v2631_v3, %v3698_v0  ;;  %v994_v59 = vpop.f32.mrb[49].mxu0  ;;  %2709 = vmatprep.subr.bf16.mxu0 %v4640_v56  ;;  %2781 = vmatprep.subr.bf16.mxu1 %v4640_v56  ;;  %v4645_v0 = vld [vmem:[#allocation8_spill] sm:$0xff]  ;;  %v318_v41 = vpop.permute.xlu0 %317 }
 0x14b   :  { %v2710_v43 = vpack.c.bf16 %v1088_v10, %v1087_v19  ;;  %v995_v52 = vadd.f32 %v994_v59, %v4643_v20  ;;  %v850_v46 = vadd.f32 %v4645_v0, %v4644_v39  ;;  %v4657_v10 = vld [vmem:[#allocation14_spill] sm:$0xff]  ;;  %v483_v59 = vpop.permute.xlu1 %482 }
 0x14c   :  { %v1090_v58 = vmax.f32 %v840_v16, %v1000_v27  ;;  %v865_v19 = vadd.f32 %v4657_v10, %v3761_v31  ;;  %v4659_v31 = vld [vmem:[#allocation17_spill] sm:$0xff] }
 0x14d   :  { %v1089_v28 = vmax.f32 %v835_v12, %v995_v52  ;;  %v2634_v32 = vpop.f32.mrb[50].mxu0  ;;  %2711 = vmatpush1.bf16.msra.mxu0 %v2710_v43  ;;  %2797 = vmatpush1.bf16.msra.mxu1 %v2710_v43  ;;  %v1110_v10 = vld [vmem:[%s4603_s3 + $0x28] sm:$0xff] }
 0x14e   :  { %v1010_v5 = vadd.f32 %v2634_v32, %v4646_v1  ;;  %v1004_v54 = vpop.f32.mrb[51].mxu0  ;;  %2712 = vmatprep.subr.bf16.mxu0 %v4640_v56  ;;  %2782 = vmatprep.subr.bf16.mxu1 %v4640_v56  ;;  %v478_v23 = vpop.permute.xlu0 %477 }
 0x14f   :  { %v2713_v37 = vpack.c.bf16 %v1090_v58, %v1089_v28  ;;  %v1005_v11 = vadd.f32 %v1004_v54, %v4649_v38  ;;  %v333_v1 = vpop.permute.xlu1 %332 }
 0x150   :  { %v1092_v15 = vmax.f32 %v850_v46, %v1010_v5 }
 0x151   :  { %v1091_v63 = vmax.f32 %v845_v60, %v1005_v11  ;;  %v2637_v26 = vpop.f32.mrb[52].mxu0  ;;  %2714 = vmatpush1.bf16.msra.mxu0 %v2713_v37  ;;  %2798 = vmatpush1.bf16.msra.mxu1 %v2713_v37 }
 0x152   :  { %v1020_v44 = vadd.f32 %v2637_v26, %v4652_v34  ;;  %v1014_v45 = vpop.f32.mrb[53].mxu0  ;;  %2715 = vmatprep.subr.bf16.mxu0 %v4640_v56  ;;  %2783 = vmatprep.subr.bf16.mxu1 %v4640_v56  ;;  %v328_v62 = vpop.permute.xlu0 %327 }
 0x153   :  { %v2716_v24 = vpack.c.bf16 %v1092_v15, %v1091_v63  ;;  %v1015_v33 = vadd.f32 %v1014_v45, %v4655_v13  ;;  %v4663_v15 = vld [vmem:[#allocation23_spill] sm:$0xff] }
 0x154   :  { %v1094_v48 = vmax.f32 %v860_v6, %v1020_v44  ;;  %v895_v63 = vadd.f32 %v4663_v15, %v318_v41  ;;  %v4664_v44 = vld [vmem:[#allocation26_spill] sm:$0xff]  ;;  %v1166_v15 = vld [vmem:[%s4603_s3 + $0x1e8] sm:$0xff] }
 0x155   :  { %v1093_v40 = vmax.f32 %v855_v18, %v1015_v33  ;;  %v2640_v53 = vpop.f32.mrb[54].mxu0  ;;  %2717 = vmatpush1.bf16.msra.mxu0 %v2716_v24  ;;  %2799 = vmatpush1.bf16.msra.mxu1 %v2716_v24  ;;  %v910_v45 = vadd.f32 %v4664_v44, %v333_v1  ;;  %v905_v18 = vadd.f32 %v4665_v49, %v328_v62  ;;  %v1122_v1 = vld [vmem:[%s4603_s3 + $0x88] sm:$0xff]  ;;  %v1131_v44 = vld [vmem:[%s4603_s3 + $0xd0] sm:$0xff]  ;;  %v1133_v49 = vld [vmem:[%s4603_s3 + $0xe0] sm:$0xff] }
 0x156   :  { %v1030_v50 = vadd.f32 %v2640_v53, %v3771_v2  ;;  %v1024_v22 = vpop.f32.mrb[55].mxu0  ;;  %2718 = vmatprep.subr.bf16.mxu0 %v4640_v56  ;;  %2784 = vmatprep.subr.bf16.mxu1 %v4640_v56  ;;  %v4658_v2 = vld [vmem:[#allocation16_spill] sm:$0xff]  ;;  %v488_v34 = vpop.permute.xlu0 %487  ;;  %v1143_v53 = vld [vmem:[%s4603_s3 + $0x130] sm:$0xff]  ;;  %v1162_v62 = vld [vmem:[%s4603_s3 + $0x1c8] sm:$0xff] }
 0x157   :  { %v2719_v3 = vpack.c.bf16 %v1094_v48, %v1093_v40  ;;  %v1025_v16 = vadd.f32 %v1024_v22, %v3773_v55  ;;  %v880_v12 = vadd.f32 %v4658_v2, %v3788_v47  ;;  %v875_v55 = vadd.f32 %v4659_v31, %v3793_v9  ;;  %v4660_v47 = vld [vmem:[#allocation19_spill] sm:$0xff]  ;;  %v4661_v9 = vld [vmem:[#allocation21_spill] sm:$0xff]  ;;  %v1105_v40 = vld [vmem:[%s4603_s3] sm:$0xff] }
 0x158   :  { %v1096_v27 = vmax.f32 %v870_v30, %v1030_v50  ;;  %v890_v0 = vadd.f32 %v4660_v47, %v3820_v42  ;;  %v885_v5 = vadd.f32 %v4661_v9, %v3825_v57  ;;  %v4662_v42 = vld [vmem:[#allocation22_spill] sm:$0xff]  ;;  %v1146_v30 = vld [vmem:[%s4603_s3 + $0x148] sm:$0xff]  ;;  %v1145_v22 = vld [vmem:[%s4603_s3 + $0x140] sm:$0xff] }
 0x159   :  { %v1095_v61 = vmax.f32 %v865_v19, %v1025_v16  ;;  %v2643_v36 = vpop.f32.mrb[56].mxu0  ;;  %2720 = vmatpush1.bf16.msra.mxu0 %v2719_v3  ;;  %2800 = vmatpush1.bf16.msra.mxu1 %v2719_v3  ;;  %v1107_v50 = vld [vmem:[%s4603_s3 + $0x10] sm:$0xff]  ;;  %v1148_v19 = vld [vmem:[%s4603_s3 + $0x158] sm:$0xff]  ;;  %v1109_v3 = vld [vmem:[%s4603_s3 + $0x20] sm:$0xff] }
 0x15a   :  { %v1040_v43 = vadd.f32 %v2643_v36, %v3803_v29  ;;  %v1034_v20 = vpop.f32.mrb[57].mxu0  ;;  %2721 = vmatprep.subr.bf16.mxu0 %v4640_v56  ;;  %2785 = vmatprep.subr.bf16.mxu1 %v4640_v56  ;;  %v1147_v16 = vld [vmem:[%s4603_s3 + $0x150] sm:$0xff]  ;;  %v1149_v36 = vld [vmem:[%s4603_s3 + $0x160] sm:$0xff]  ;;  %v1152_v2 = vld [vmem:[%s4603_s3 + $0x178] sm:$0xff] }
 0x15b   :  { %v2722_v52 = vpack.c.bf16 %v1096_v27, %v1095_v61  ;;  %v1035_v58 = vadd.f32 %v1034_v20, %v3805_v21  ;;  %v1112_v27 = vld [vmem:[%s4603_s3 + $0x38] sm:$0xff]  ;;  %v1111_v61 = vld [vmem:[%s4603_s3 + $0x30] sm:$0xff]  ;;  %v1154_v31 = vld [vmem:[%s4603_s3 + $0x188] sm:$0xff] }
 0x15c   :  { %v1098_v28 = vmax.f32 %v880_v12, %v1040_v43  ;;  %v1113_v12 = vld [vmem:[%s4603_s3 + $0x40] sm:$0xff]  ;;  %v1151_v43 = vld [vmem:[%s4603_s3 + $0x170] sm:$0xff]  ;;  %v1116_v20 = vld [vmem:[%s4603_s3 + $0x58] sm:$0xff] }
 0x15d   :  { %v1097_v32 = vmax.f32 %v875_v55, %v1035_v58  ;;  %v2646_v39 = vpop.f32.mrb[58].mxu0  ;;  %2723 = vmatpush1.bf16.msra.mxu0 %v2722_v52  ;;  %2801 = vmatpush1.bf16.msra.mxu1 %v2722_v52  ;;  %v1115_v55 = vld [vmem:[%s4603_s3 + $0x50] sm:$0xff]  ;;  %v1153_v52 = vld [vmem:[%s4603_s3 + $0x180] sm:$0xff]  ;;  %v1118_v58 = vld [vmem:[%s4603_s3 + $0x68] sm:$0xff] }
 0x15e   :  { %v1050_v29 = vadd.f32 %v2646_v39, %v3835_v51  ;;  %v1044_v46 = vpop.f32.mrb[59].mxu0  ;;  %2724 = vmatprep.subr.bf16.mxu0 %v4640_v56  ;;  %2786 = vmatprep.subr.bf16.mxu1 %v4640_v56  ;;  %v900_v51 = vadd.f32 %v4662_v42, %v323_v25  ;;  %v1155_v39 = vld [vmem:[%s4603_s3 + $0x190] sm:$0xff]  ;;  %v1120_v47 = vld [vmem:[%s4603_s3 + $0x78] sm:$0xff] }
 0x15f   :  { %v2725_v21 = vpack.c.bf16 %v1098_v28, %v1097_v32  ;;  %v1045_v54 = vadd.f32 %v1044_v46, %v3837_v35  ;;  %v493_v35 = vpop.permute.xlu1 %492  ;;  %v1156_v28 = vld [vmem:[%s4603_s3 + $0x198] sm:$0xff]  ;;  %v1117_v32 = vld [vmem:[%s4603_s3 + $0x60] sm:$0xff] }
 0x160   :  { %v1100_v4 = vmax.f32 %v890_v0, %v1050_v29  ;;  %v1158_v0 = vld [vmem:[%s4603_s3 + $0x1a8] sm:$0xff]  ;;  %v1119_v29 = vld [vmem:[%s4603_s3 + $0x70] sm:$0xff]  ;;  %v1157_v46 = vld [vmem:[%s4603_s3 + $0x1a0] sm:$0xff] }
 0x161   :  { %v1099_v60 = vmax.f32 %v885_v5, %v1045_v54  ;;  %v2649_v37 = vpop.f32.mrb[60].mxu0  ;;  %2726 = vmatpush1.bf16.msra.mxu0 %v2725_v21  ;;  %2802 = vmatpush1.bf16.msra.mxu1 %v2725_v21  ;;  %v1160_v9 = vld [vmem:[%s4603_s3 + $0x1b8] sm:$0xff]  ;;  %v1121_v5 = vld [vmem:[%s4603_s3 + $0x80] sm:$0xff]  ;;  %v1159_v21 = vld [vmem:[%s4603_s3 + $0x1b0] sm:$0xff] }
 0x162   :  { %v1060_v38 = vadd.f32 %v2649_v37, %v483_v59  ;;  %v1054_v11 = vpop.f32.mrb[61].mxu0  ;;  %2727 = vmatprep.subr.bf16.mxu0 %v4640_v56  ;;  %2787 = vmatprep.subr.bf16.mxu1 %v4640_v56  ;;  %v1150_v59 = vld [vmem:[%s4603_s3 + $0x168] sm:$0xff]  ;;  %v1124_v54 = vld [vmem:[%s4603_s3 + $0x98] sm:$0xff] }
 0x163   :  { %v2728_v57 = vpack.c.bf16 %v1100_v4, %v1099_v60  ;;  %v1055_v26 = vadd.f32 %v1054_v11, %v478_v23  ;;  %v1114_v23 = vld [vmem:[%s4603_s3 + $0x48] sm:$0xff]  ;;  %v1123_v4 = vld [vmem:[%s4603_s3 + $0x90] sm:$0xff]  ;;  %v1161_v60 = vld [vmem:[%s4603_s3 + $0x1c0] sm:$0xff] }
 0x164   :  { %v1102_v8 = vmax.f32 %v900_v51, %v1060_v38  ;;  %v1126_v37 = vld [vmem:[%s4603_s3 + $0xa8] sm:$0xff]  ;;  %v1164_v42 = vld [vmem:[%s4603_s3 + $0x1d8] sm:$0xff]  ;;  %v1125_v51 = vld [vmem:[%s4603_s3 + $0xa0] sm:$0xff] }
 0x165   :  { %v1101_v14 = vmax.f32 %v895_v63, %v1055_v26  ;;  %v2652_v6 = vpop.f32.mrb[62].mxu0  ;;  %2729 = vmatpush1.bf16.msra.mxu0 %v2728_v57  ;;  %2803 = vmatpush1.bf16.msra.mxu1 %v2728_v57  ;;  %v1163_v38 = vld [vmem:[%s4603_s3 + $0x1d0] sm:$0xff]  ;;  %v1128_v11 = vld [vmem:[%s4603_s3 + $0xb8] sm:$0xff]  ;;  %v1165_v57 = vld [vmem:[%s4603_s3 + $0x1e0] sm:$0xff] }
 0x166   :  { %v1070_v25 = vadd.f32 %v2652_v6, %v493_v35  ;;  %v1064_v7 = vpop.f32.mrb[63].mxu0  ;;  %2730 = vmatprep.subr.bf16.mxu0 %v4640_v56  ;;  %2788 = vmatprep.subr.bf16.mxu1 %v4640_v56  ;;  %v1127_v63 = vld [vmem:[%s4603_s3 + $0xb0] sm:$0xff]  ;;  %v1130_v26 = vld [vmem:[%s4603_s3 + $0xc8] sm:$0xff]  ;;  %v1129_v35 = vld [vmem:[%s4603_s3 + $0xc0] sm:$0xff] }
 0x167   :  { %v2731_v24 = vpack.c.bf16 %v1102_v8, %v1101_v14  ;;  %v1065_v13 = vadd.f32 %v1064_v7, %v488_v34  ;;  %v1168_v8 = vld [vmem:[%s4603_s3 + $0x1f8] sm:$0xff]  ;;  %v1167_v14 = vld [vmem:[%s4603_s3 + $0x1f0] sm:$0xff]  ;;  %v1170_v34 = vld [vmem:[%s4603_s3 + $0x208] sm:$0xff] }
 0x168   :  { %v1104_v33 = vmax.f32 %v910_v45, %v1070_v25  ;;  %v1132_v6 = vld [vmem:[%s4603_s3 + $0xd8] sm:$0xff]  ;;  %v1169_v45 = vld [vmem:[%s4603_s3 + $0x200] sm:$0xff]  ;;  %v1134_v25 = vld [vmem:[%s4603_s3 + $0xe8] sm:$0xff] }
 0x169   :  { %v1103_v41 = vmax.f32 %v905_v18, %v1065_v13  ;;  %2732 = vmatpush1.bf16.msra.mxu0 %v2731_v24  ;;  %2804 = vmatpush1.bf16.msra.mxu1 %v2731_v24  ;;  %v1172_v7 = vld [vmem:[%s4603_s3 + $0x218] sm:$0xff]  ;;  %v1171_v18 = vld [vmem:[%s4603_s3 + $0x210] sm:$0xff]  ;;  %v1174_v13 = vld [vmem:[%s4603_s3 + $0x228] sm:$0xff] }
 0x16a   :  { %2733 = vmatprep.subr.bf16.mxu0 %v4640_v56  ;;  %2789 = vmatprep.subr.bf16.mxu1 %v4640_v56  ;;  %v1136_v24 = vld [vmem:[%s4603_s3 + $0xf8] sm:$0xff] }
 0x16b   :  { %v2734_v48 = vpack.c.bf16 %v1104_v33, %v1103_v41  ;;  %v1135_v33 = vld [vmem:[%s4603_s3 + $0xf0] sm:$0xff]  ;;  %v1173_v41 = vld [vmem:[%s4603_s3 + $0x220] sm:$0xff] }
 0x16d   :  { %2735 = vmatpush1.bf16.msra.mxu0 %v2734_v48  ;;  %2805 = vmatpush1.bf16.msra.mxu1 %v2734_v48  ;;  %v1138_v48 = vld [vmem:[%s4603_s3 + $0x108] sm:$0xff] }
 0x170   :  { %1682 = vmatmul.mubr.f32.vlgmr.msra.gmra.mrb[64].mxu0 %v1105_v40  ;;  %1777 = vmatmul.mubr.f32.vlgmr.msra.gmra.mrb[0].mxu1 %v1143_v53  ;;  %v1176_v40 = vld [vmem:[%s4603_s3 + $0x238] sm:$0xff]  ;;  %v1137_v53 = vld [vmem:[%s4603_s3 + $0x100] sm:$0xff] }
 0x171   :  { %1686 = vmatprep.mubr.f32.mxu0 %v1108_v17  ;;  %1781 = vmatprep.mubr.f32.mxu1 %v1146_v30  ;;  %v1175_v17 = vld [vmem:[%s4603_s3 + $0x230] sm:$0xff]  ;;  %v1140_v30 = vld [vmem:[%s4603_s3 + $0x118] sm:$0xff] }
 0x174   :  { %1687 = vmatmul.mubr.f32.gmra.mrb[66].mxu0 %v1107_v50  ;;  %1782 = vmatmul.mubr.f32.gmra.mrb[2].mxu1 %v1145_v22  ;;  %v1178_v50 = vld [vmem:[%s4603_s3 + $0x248] sm:$0xff]  ;;  %v1139_v22 = vld [vmem:[%s4603_s3 + $0x110] sm:$0xff] }
 0x175   :  { %1691 = vmatprep.mubr.f32.mxu0 %v1110_v10  ;;  %1786 = vmatprep.mubr.f32.mxu1 %v1148_v19  ;;  %v1177_v10 = vld [vmem:[%s4603_s3 + $0x240] sm:$0xff]  ;;  %v1142_v19 = vld [vmem:[%s4603_s3 + $0x128] sm:$0xff] }
 0x178   :  { %1692 = vmatmul.mubr.f32.gmra.mrb[68].mxu0 %v1109_v3  ;;  %1787 = vmatmul.mubr.f32.gmra.mrb[4].mxu1 %v1147_v16  ;;  %v1180_v3 = vld [vmem:[%s4603_s3 + $0x258] sm:$0xff]  ;;  %v1141_v16 = vld [vmem:[%s4603_s3 + $0x120] sm:$0xff] }
 0x179   :  { %1696 = vmatprep.mubr.f32.mxu0 %v1112_v27  ;;  %1791 = vmatprep.mubr.f32.mxu1 %v1150_v59  ;;  %v1179_v27 = vld [vmem:[%s4603_s3 + $0x250] sm:$0xff]  ;;  %v1182_v59 = vld [vmem:[%s4603_s3 + $0x268] sm:$0xff] }
 0x17c   :  { %1697 = vmatmul.mubr.f32.gmra.mrb[70].mxu0 %v1111_v61  ;;  %1792 = vmatmul.mubr.f32.gmra.mrb[6].mxu1 %v1149_v36  ;;  %v1181_v61 = vld [vmem:[%s4603_s3 + $0x260] sm:$0xff]  ;;  %v1184_v36 = vld [vmem:[%s4603_s3 + $0x278] sm:$0xff] }
 0x17d   :  { %1701 = vmatprep.mubr.f32.mxu0 %v1114_v23  ;;  %1796 = vmatprep.mubr.f32.mxu1 %v1152_v2  ;;  %v1183_v23 = vld [vmem:[%s4603_s3 + $0x270] sm:$0xff]  ;;  %v1186_v2 = vld [vmem:[%s4603_s3 + $0x288] sm:$0xff] }
 0x180   :  { %1702 = vmatmul.mubr.f32.gmra.mrb[72].mxu0 %v1113_v12  ;;  %1797 = vmatmul.mubr.f32.gmra.mrb[8].mxu1 %v1151_v43  ;;  %v1185_v12 = vld [vmem:[%s4603_s3 + $0x280] sm:$0xff]  ;;  %v1188_v43 = vld [vmem:[%s4603_s3 + $0x298] sm:$0xff] }
 0x181   :  { %1706 = vmatprep.mubr.f32.mxu0 %v1116_v20  ;;  %1801 = vmatprep.mubr.f32.mxu1 %v1154_v31  ;;  %v1187_v20 = vld [vmem:[%s4603_s3 + $0x290] sm:$0xff]  ;;  %v1190_v31 = vld [vmem:[%s4603_s3 + $0x2a8] sm:$0xff] }
 0x184   :  { %1707 = vmatmul.mubr.f32.gmra.mrb[74].mxu0 %v1115_v55  ;;  %1802 = vmatmul.mubr.f32.gmra.mrb[10].mxu1 %v1153_v52  ;;  %v1189_v55 = vld [vmem:[%s4603_s3 + $0x2a0] sm:$0xff]  ;;  %v1192_v52 = vld [vmem:[%s4603_s3 + $0x2b8] sm:$0xff] }
 0x185   :  { %1711 = vmatprep.mubr.f32.mxu0 %v1118_v58  ;;  %1806 = vmatprep.mubr.f32.mxu1 %v1156_v28  ;;  %v1191_v58 = vld [vmem:[%s4603_s3 + $0x2b0] sm:$0xff]  ;;  %v1194_v28 = vld [vmem:[%s4603_s3 + $0x2c8] sm:$0xff] }
 0x188   :  { %1712 = vmatmul.mubr.f32.gmra.mrb[76].mxu0 %v1117_v32  ;;  %1807 = vmatmul.mubr.f32.gmra.mrb[12].mxu1 %v1155_v39  ;;  %v1193_v32 = vld [vmem:[%s4603_s3 + $0x2c0] sm:$0xff]  ;;  %v1196_v39 = vld [vmem:[%s4603_s3 + $0x2d8] sm:$0xff] }
 0x189   :  { %1716 = vmatprep.mubr.f32.mxu0 %v1120_v47  ;;  %1811 = vmatprep.mubr.f32.mxu1 %v1158_v0  ;;  %v1195_v47 = vld [vmem:[%s4603_s3 + $0x2d0] sm:$0xff]  ;;  %v1198_v0 = vld [vmem:[%s4603_s3 + $0x2e8] sm:$0xff] }
 0x18c   :  { %1717 = vmatmul.mubr.f32.gmra.mrb[78].mxu0 %v1119_v29  ;;  %1812 = vmatmul.mubr.f32.gmra.mrb[14].mxu1 %v1157_v46  ;;  %v1197_v29 = vld [vmem:[%s4603_s3 + $0x2e0] sm:$0xff]  ;;  %v1200_v46 = vld [vmem:[%s4603_s3 + $0x2f8] sm:$0xff] }
 0x18d   :  { %1721 = vmatprep.mubr.f32.mxu0 %v1122_v1  ;;  %1816 = vmatprep.mubr.f32.mxu1 %v1160_v9  ;;  %v1199_v1 = vld [vmem:[%s4603_s3 + $0x2f0] sm:$0xff]  ;;  %v1202_v9 = vld [vmem:[%s4603_s3 + $0x308] sm:$0xff] }
 0x190   :  { %1722 = vmatmul.mubr.f32.gmra.mrb[80].mxu0 %v1121_v5  ;;  %1817 = vmatmul.mubr.f32.gmra.mrb[16].mxu1 %v1159_v21  ;;  %v1201_v5 = vld [vmem:[%s4603_s3 + $0x300] sm:$0xff]  ;;  %v4177_v21 = vpop.permute.xlu0 %1379 }
 0x191   :  { %1726 = vmatprep.mubr.f32.mxu0 %v1124_v54  ;;  %1821 = vmatprep.mubr.f32.mxu1 %v1162_v62  ;;  %v1204_v54 = vld [vmem:[%s4603_s3 + $0x318] sm:$0xff]  ;;  %v1203_v62 = vld [vmem:[%s4603_s3 + $0x310] sm:$0xff] }
 0x194   :  { %1727 = vmatmul.mubr.f32.gmra.mrb[82].mxu0 %v1123_v4  ;;  %1822 = vmatmul.mubr.f32.gmra.mrb[18].mxu1 %v1161_v60  ;;  %v1206_v4 = vld [vmem:[%s4603_s3 + $0x328] sm:$0xff]  ;;  %v4188_v60 = vpop.permute.xlu1 %1384 }
 0x195   :  { %1731 = vmatprep.mubr.f32.mxu0 %v1126_v37  ;;  %1826 = vmatprep.mubr.f32.mxu1 %v1164_v42  ;;  %v4190_v37 = vpop.permute.xlu0 %1539  ;;  %v1205_v42 = vld [vmem:[%s4603_s3 + $0x320] sm:$0xff] }
 0x198   :  { %1732 = vmatmul.mubr.f32.gmra.mrb[84].mxu0 %v1125_v51  ;;  %1827 = vmatmul.mubr.f32.gmra.mrb[20].mxu1 %v1163_v38  ;;  %v1208_v51 = vld [vmem:[%s4603_s3 + $0x338] sm:$0xff]  ;;  %v1207_v38 = vld [vmem:[%s4603_s3 + $0x330] sm:$0xff] }
 0x199   :  { %1736 = vmatprep.mubr.f32.mxu0 %v1128_v11  ;;  %1831 = vmatprep.mubr.f32.mxu1 %v1166_v15  ;;  %v4201_v11 = vpop.permute.xlu1 %1544  ;;  %v4203_v15 = vpop.permute.xlu0 %1299 }
 0x19c   :  { %1737 = vmatmul.mubr.f32.gmra.mrb[86].mxu0 %v1127_v63  ;;  %1832 = vmatmul.mubr.f32.gmra.mrb[22].mxu1 %v1165_v57  ;;  %v1210_v63 = vld [vmem:[%s4603_s3 + $0x348] sm:$0xff]  ;;  %v1209_v57 = vld [vmem:[%s4603_s3 + $0x340] sm:$0xff] }
 0x19d   :  { %1741 = vmatprep.mubr.f32.mxu0 %v1130_v26  ;;  %1836 = vmatprep.mubr.f32.mxu1 %v1168_v8  ;;  %v1212_v26 = vld [vmem:[%s4603_s3 + $0x358] sm:$0xff]  ;;  %v4214_v8 = vpop.permute.xlu1 %1304 }
 0x1a0   :  { %1742 = vmatmul.mubr.f32.gmra.mrb[88].mxu0 %v1129_v35  ;;  %1837 = vmatmul.mubr.f32.gmra.mrb[24].mxu1 %v1167_v14  ;;  %v4216_v35 = vpop.permute.xlu0 %1459  ;;  %v1211_v14 = vld [vmem:[%s4603_s3 + $0x350] sm:$0xff] }
 0x1a1   :  { %1746 = vmatprep.mubr.f32.mxu0 %v1132_v6  ;;  %1841 = vmatprep.mubr.f32.mxu1 %v1170_v34  ;;  %v1214_v6 = vld [vmem:[%s4603_s3 + $0x368] sm:$0xff]  ;;  %v1213_v34 = vld [vmem:[%s4603_s3 + $0x360] sm:$0xff] }
 0x1a4   :  { %1747 = vmatmul.mubr.f32.gmra.mrb[90].mxu0 %v1131_v44  ;;  %1842 = vmatmul.mubr.f32.gmra.mrb[26].mxu1 %v1169_v45  ;;  %v4227_v44 = vpop.permute.xlu1 %1464  ;;  %v4229_v45 = vpop.permute.xlu0 %1389 }
 0x1a5   :  { %1751 = vmatprep.mubr.f32.mxu0 %v1134_v25  ;;  %1846 = vmatprep.mubr.f32.mxu1 %v1172_v7  ;;  %v1216_v25 = vld [vmem:[%s4603_s3 + $0x378] sm:$0xff]  ;;  %v1215_v7 = vld [vmem:[%s4603_s3 + $0x370] sm:$0xff] }
 0x1a8   :  { %1752 = vmatmul.mubr.f32.gmra.mrb[92].mxu0 %v1133_v49  ;;  %1847 = vmatmul.mubr.f32.gmra.mrb[28].mxu1 %v1171_v18  ;;  %v1218_v49 = vld [vmem:[%s4603_s3 + $0x388] sm:$0xff]  ;;  %v4240_v18 = vpop.permute.xlu1 %1394 }
 0x1a9   :  { %1756 = vmatprep.mubr.f32.mxu0 %v1136_v24  ;;  %1851 = vmatprep.mubr.f32.mxu1 %v1174_v13  ;;  %v4242_v24 = vpop.permute.xlu0 %1549  ;;  %v1217_v13 = vld [vmem:[%s4603_s3 + $0x380] sm:$0xff] }
 0x1ac   :  { %1757 = vmatmul.mubr.f32.gmra.mrb[94].mxu0 %v1135_v33  ;;  %1852 = vmatmul.mubr.f32.gmra.mrb[30].mxu1 %v1173_v41  ;;  %v1220_v33 = vld [vmem:[%s4603_s3 + $0x398] sm:$0xff]  ;;  %v1219_v41 = vld [vmem:[%s4603_s3 + $0x390] sm:$0xff] }
 0x1ad   :  { %1761 = vmatprep.mubr.f32.mxu0 %v1138_v48  ;;  %1856 = vmatprep.mubr.f32.mxu1 %v1176_v40  ;;  %v4253_v48 = vpop.permute.xlu1 %1554  ;;  %v4255_v40 = vpop.permute.xlu0 %1309 }
 0x1b0   :  { %1762 = vmatmul.mubr.f32.gmra.mrb[96].mxu0 %v1137_v53  ;;  %1857 = vmatmul.mubr.f32.gmra.mrb[32].mxu1 %v1175_v17  ;;  %v1222_v53 = vld [vmem:[%s4603_s3 + $0x3a8] sm:$0xff]  ;;  %v1221_v17 = vld [vmem:[%s4603_s3 + $0x3a0] sm:$0xff] }
 0x1b1   :  { %1766 = vmatprep.mubr.f32.mxu0 %v1140_v30  ;;  %1861 = vmatprep.mubr.f32.mxu1 %v1178_v50  ;;  %v1224_v30 = vld [vmem:[%s4603_s3 + $0x3b8] sm:$0xff]  ;;  %v4266_v50 = vpop.permute.xlu1 %1314 }
 0x1b4   :  { %1767 = vmatmul.mubr.f32.gmra.mrb[98].mxu0 %v1139_v22  ;;  %1862 = vmatmul.mubr.f32.gmra.mrb[34].mxu1 %v1177_v10  ;;  %v4268_v22 = vpop.permute.xlu0 %1469  ;;  %v1223_v10 = vld [vmem:[%s4603_s3 + $0x3b0] sm:$0xff] }
 0x1b5   :  { %1771 = vmatprep.mubr.f32.mxu0 %v1142_v19  ;;  %1866 = vmatprep.mubr.f32.mxu1 %v1180_v3  ;;  %v1226_v19 = vld [vmem:[%s4603_s3 + $0x3c8] sm:$0xff]  ;;  %v1225_v3 = vld [vmem:[%s4603_s3 + $0x3c0] sm:$0xff] }
 0x1b8   :  { %1772 = vmatmul.mubr.f32.gmra.mrb[100].mxu0 %v1141_v16  ;;  %1867 = vmatmul.mubr.f32.gmra.mrb[36].mxu1 %v1179_v27  ;;  %v4279_v16 = vpop.permute.xlu1 %1474  ;;  %v4281_v27 = vpop.permute.xlu0 %1399 }
 0x1b9   :  { %1871 = vmatprep.mubr.f32.mxu1 %v1182_v59  ;;  %v1228_v59 = vld [vmem:[%s4603_s3 + $0x3d8] sm:$0xff] }
 0x1bc   :  { %1872 = vmatmul.mubr.f32.gmra.mrb[38].mxu1 %v1181_v61  ;;  %v1227_v61 = vld [vmem:[%s4603_s3 + $0x3d0] sm:$0xff] }
 0x1bd   :  { %1876 = vmatprep.mubr.f32.mxu1 %v1184_v36  ;;  %v1230_v36 = vld [vmem:[%s4603_s3 + $0x3e8] sm:$0xff] }
 0x1c0   :  { %1877 = vmatmul.mubr.f32.gmra.mrb[40].mxu1 %v1183_v23  ;;  %v4292_v23 = vpop.permute.xlu1 %1404 }
 0x1c1   :  { %1881 = vmatprep.mubr.f32.mxu1 %v1186_v2  ;;  %v4294_v2 = vpop.permute.xlu0 %1559 }
 0x1c4   :  { %1882 = vmatmul.mubr.f32.gmra.mrb[42].mxu1 %v1185_v12  ;;  %v1229_v12 = vld [vmem:[%s4603_s3 + $0x3e0] sm:$0xff] }
 0x1c5   :  { %1886 = vmatprep.mubr.f32.mxu1 %v1188_v43  ;;  %v1232_v43 = vld [vmem:[%s4603_s3 + $0x3f8] sm:$0xff] }
 0x1c8   :  { %1887 = vmatmul.mubr.f32.gmra.mrb[44].mxu1 %v1187_v20  ;;  %v1231_v20 = vld [vmem:[%s4603_s3 + $0x3f0] sm:$0xff] }
 0x1c9   :  { %1891 = vmatprep.mubr.f32.mxu1 %v1190_v31  ;;  %v4305_v31 = vpop.permute.xlu1 %1564 }
 0x1ca   :  { %4666 = vst [vmem:[#allocation5_spill] sm:$0xff] %v4305_v31 }
 0x1cc   :  { %1892 = vmatmul.mubr.f32.gmra.mrb[46].mxu1 %v1189_v55  ;;  %v4307_v55 = vpop.permute.xlu0 %1319 }
 0x1cd   :  { %1896 = vmatprep.mubr.f32.mxu1 %v1192_v52  ;;  %v4309_v52 = vpop.permute.xlu1 %1324 }
 0x1d0   :  { %1897 = vmatmul.mubr.f32.gmra.mrb[48].mxu1 %v1191_v58  ;;  %v4311_v58 = vpop.permute.xlu0 %1479 }
 0x1d1   :  { %1901 = vmatprep.mubr.f32.mxu1 %v1194_v28  ;;  %v4313_v28 = vpop.permute.xlu1 %1484 }
 0x1d4   :  { %1902 = vmatmul.mubr.f32.gmra.mrb[50].mxu1 %v1193_v32  ;;  %v4315_v32 = vpop.permute.xlu0 %1409 }
 0x1d5   :  { %1906 = vmatprep.mubr.f32.mxu1 %v1196_v39  ;;  %4667 = vst [vmem:[#allocation7_spill] sm:$0xff] %v4315_v32  ;;  %v4317_v39 = vpop.permute.xlu1 %1414 }
 0x1d6   :  { %4668 = vst [vmem:[#allocation6_spill] sm:$0xff] %v4317_v39 }
 0x1d8   :  { %1907 = vmatmul.mubr.f32.gmra.mrb[52].mxu1 %v1195_v47  ;;  %v4319_v47 = vpop.permute.xlu0 %1569 }
 0x1d9   :  { %1911 = vmatprep.mubr.f32.mxu1 %v1198_v0  ;;  %4669 = vst [vmem:[#allocation15_spill] sm:$0xff] %v4319_v47  ;;  %v4321_v0 = vpop.permute.xlu1 %1574 }
 0x1da   :  { %4670 = vst [vmem:[#allocation8_spill] sm:$0xff] %v4321_v0 }
 0x1dc   :  { %1912 = vmatmul.mubr.f32.gmra.mrb[54].mxu1 %v1197_v29  ;;  %v4323_v29 = vpop.permute.xlu0 %1329 }
 0x1dd   :  { %1916 = vmatprep.mubr.f32.mxu1 %v1200_v46  ;;  %v4325_v46 = vpop.permute.xlu1 %1334 }
 0x1e0   :  { %1917 = vmatmul.mubr.f32.gmra.mrb[56].mxu1 %v1199_v1  ;;  %v4327_v1 = vpop.permute.xlu0 %1489 }
 0x1e1   :  { %1921 = vmatprep.mubr.f32.mxu1 %v1202_v9  ;;  %v4329_v9 = vpop.permute.xlu1 %1494 }
 0x1e4   :  { %1922 = vmatmul.mubr.f32.gmra.mrb[58].mxu1 %v1201_v5  ;;  %v4331_v5 = vpop.permute.xlu0 %1419 }
 0x1e5   :  { %1926 = vmatprep.mubr.f32.mxu1 %v1204_v54  ;;  %4671 = vst [vmem:[#allocation18_spill] sm:$0xff] %v4331_v5 }
 0x1e8   :  { %1927 = vmatmul.mubr.f32.gmra.mrb[60].mxu1 %v1203_v62 }
 0x1e9   :  { %1931 = vmatprep.mubr.f32.mxu1 %v1206_v4 }
 0x1ec   :  { %1932 = vmatmul.mubr.f32.gmra.mrb[62].mxu1 %v1205_v42 }
 0x1ed   :  { %1936 = vmatprep.mubr.f32.mxu1 %v1208_v51 }
 0x1f0   :  { %1937 = vmatmul.mubr.f32.gmra.mrb[64].mxu1 %v1207_v38 }
 0x1f1   :  { %1941 = vmatprep.mubr.f32.mxu1 %v1210_v63 }
 0x1f4   :  { %1942 = vmatmul.mubr.f32.gmra.mrb[66].mxu1 %v1209_v57 }
 0x1f5   :  { %1946 = vmatprep.mubr.f32.mxu1 %v1212_v26  ;;  %v4341_v26 = vpop.permute.xlu1 %1424 }
 0x1f6   :  { %4672 = vst [vmem:[#allocation10_spill] sm:$0xff] %v4341_v26 }
 0x1f8   :  { %1947 = vmatmul.mubr.f32.gmra.mrb[68].mxu1 %v1211_v14  ;;  %v4343_v14 = vpop.permute.xlu0 %1579 }
 0x1f9   :  { %1951 = vmatprep.mubr.f32.mxu1 %v1214_v6  ;;  %4673 = vst [vmem:[#allocation9_spill] sm:$0xff] %v4343_v14 }
 0x1fc   :  { %1952 = vmatmul.mubr.f32.gmra.mrb[70].mxu1 %v1213_v34 }
 0x1fd   :  { %1956 = vmatprep.mubr.f32.mxu1 %v1216_v25 }
 0x200   :  { %1957 = vmatmul.mubr.f32.gmra.mrb[72].mxu1 %v1215_v7 }
 0x201   :  { %1961 = vmatprep.mubr.f32.mxu1 %v1218_v49 }
 0x204   :  { %1962 = vmatmul.mubr.f32.gmra.mrb[74].mxu1 %v1217_v13 }
 0x205   :  { %1966 = vmatprep.mubr.f32.mxu1 %v1220_v33 }
 0x208   :  { %1967 = vmatmul.mubr.f32.gmra.mrb[76].mxu1 %v1219_v41 }
 0x209   :  { %1971 = vmatprep.mubr.f32.mxu1 %v1222_v53  ;;  %v4353_v53 = vpop.permute.xlu1 %1584 }
 0x20a   :  { %4676 = vst [vmem:[#allocation11_spill] sm:$0xff] %v4353_v53 }
 0x20c   :  { %1972 = vmatmul.mubr.f32.gmra.mrb[78].mxu1 %v1221_v17  ;;  %v4355_v17 = vpop.permute.xlu0 %1339 }
 0x20d   :  { %1976 = vmatprep.mubr.f32.mxu1 %v1224_v30 }
 0x210   :  { %1977 = vmatmul.mubr.f32.gmra.mrb[80].mxu1 %v1223_v10 }
 0x211   :  { %1981 = vmatprep.mubr.f32.mxu1 %v1226_v19 }
 0x214   :  { %1982 = vmatmul.mubr.f32.gmra.mrb[82].mxu1 %v1225_v3 }
 0x215   :  { %1986 = vmatprep.mubr.f32.mxu1 %v1228_v59 }
 0x218   :  { %1987 = vmatmul.mubr.f32.gmra.mrb[84].mxu1 %v1227_v61 }
 0x219   :  { %1991 = vmatprep.mubr.f32.mxu1 %v1230_v36 }
 0x21c   :  { %1992 = vmatmul.mubr.f32.gmra.mrb[86].mxu1 %v1229_v12 }
 0x21d   :  { %1996 = vmatprep.mubr.f32.mxu1 %v1232_v43  ;;  %v4365_v43 = vpop.permute.xlu1 %1344 }
 0x220   :  { %1997 = vmatmul.mubr.f32.gmra.mrb[88].mxu1 %v1231_v20  ;;  %v4367_v20 = vpop.permute.xlu0 %1499 }
 0x243   :  { %v4333_v54 = vpop.f32.mrb[64].mxu0  ;;  %v4335_v62 = vpop.f32.mrb[0].mxu1 }
 0x244   :  { %v1780_v4 = vpop.f32.mrb[1].mxu1  ;;  %v1685_v42 = vpop.f32.mrb[65].mxu0 }
 0x247   :  { %v4337_v51 = vpop.f32.mrb[66].mxu0  ;;  %v4339_v38 = vpop.f32.mrb[2].mxu1 }
 0x248   :  { %v1785_v63 = vpop.f32.mrb[3].mxu1  ;;  %v1690_v57 = vpop.f32.mrb[67].mxu0 }
 0x24b   :  { %v4345_v6 = vpop.f32.mrb[68].mxu0  ;;  %v4347_v34 = vpop.f32.mrb[4].mxu1 }
 0x24c   :  { %4674 = vst [vmem:[#allocation20_spill] sm:$0xff] %v4347_v34  ;;  %v1790_v25 = vpop.f32.mrb[5].mxu1  ;;  %v1695_v7 = vpop.f32.mrb[69].mxu0 }
 0x24f   :  { %v4349_v49 = vpop.f32.mrb[70].mxu0  ;;  %v4351_v13 = vpop.f32.mrb[6].mxu1 }
 0x250   :  { %4675 = vst [vmem:[#allocation24_spill] sm:$0xff] %v4351_v13  ;;  %v1795_v33 = vpop.f32.mrb[7].mxu1  ;;  %v1700_v41 = vpop.f32.mrb[71].mxu0 }
 0x253   :  { %v4357_v30 = vpop.f32.mrb[72].mxu0  ;;  %v4359_v10 = vpop.f32.mrb[8].mxu1 }
 0x254   :  { %4677 = vst [vmem:[#allocation28_spill] sm:$0xff] %v4359_v10  ;;  %v1800_v19 = vpop.f32.mrb[9].mxu1  ;;  %v1705_v3 = vpop.f32.mrb[73].mxu0 }
 0x255   :  { %v4377_v19 = vpop.permute.xlu1 %1504  ;;  %v4379_v3 = vpop.permute.xlu0 %1429 }
 0x256   :  { %4681 = vst [vmem:[#allocation13_spill] sm:$0xff] %v4379_v3 }
 0x257   :  { %v4361_v59 = vpop.f32.mrb[74].mxu0  ;;  %v4363_v61 = vpop.f32.mrb[10].mxu1 }
 0x258   :  { %4678 = vst [vmem:[#allocation25_spill] sm:$0xff] %v4363_v61  ;;  %v1805_v36 = vpop.f32.mrb[11].mxu1  ;;  %v1710_v12 = vpop.f32.mrb[75].mxu0 }
 0x259   :  { %v4389_v14 = vpop.permute.xlu1 %1434 }
 0x25a   :  { %4684 = vst [vmem:[#allocation17_spill] sm:$0xff] %v4389_v14 }
 0x25b   :  { %v4369_v4 = vpop.f32.mrb[76].mxu0  ;;  %v4371_v42 = vpop.f32.mrb[12].mxu1 }
 0x25c   :  { %4679 = vst [vmem:[#allocation12_spill] sm:$0xff] %v4371_v42  ;;  %v1810_v63 = vpop.f32.mrb[13].mxu1  ;;  %v1715_v57 = vpop.f32.mrb[77].mxu0 }
 0x25d   :  { %v4401_v0 = vpop.permute.xlu1 %1594 }
 0x25e   :  { %4688 = vst [vmem:[#allocation23_spill] sm:$0xff] %v4401_v0 }
 0x25f   :  { %v4373_v25 = vpop.f32.mrb[78].mxu0  ;;  %v4375_v7 = vpop.f32.mrb[14].mxu1 }
 0x260   :  { %4680 = vst [vmem:[#allocation29_spill] sm:$0xff] %v4375_v7  ;;  %v1815_v33 = vpop.f32.mrb[15].mxu1  ;;  %v1720_v41 = vpop.f32.mrb[79].mxu0 }
 0x261   :  { %v4391_v33 = vpop.permute.xlu0 %1589 }
 0x262   :  { %4685 = vst [vmem:[#allocation19_spill] sm:$0xff] %v4391_v33 }
 0x263   :  { %v4381_v36 = vpop.f32.mrb[80].mxu0  ;;  %v4383_v12 = vpop.f32.mrb[16].mxu1 }
 0x264   :  { %4682 = vst [vmem:[#allocation14_spill] sm:$0xff] %v4383_v12  ;;  %v1820_v56 = vpop.f32.mrb[17].mxu1  ;;  %v1725_v53 = vpop.f32.mrb[81].mxu0 }
 0x267   :  { %v4385_v26 = vpop.f32.mrb[82].mxu0  ;;  %v4387_v63 = vpop.f32.mrb[18].mxu1 }
 0x268   :  { %4683 = vst [vmem:[#allocation16_spill] sm:$0xff] %v4387_v63  ;;  %v1825_v57 = vpop.f32.mrb[19].mxu1  ;;  %v1730_v42 = vpop.f32.mrb[83].mxu0 }
 0x269   :  { %v4403_v57 = vpop.permute.xlu0 %1349 }
 0x26b   :  { %v4393_v41 = vpop.f32.mrb[84].mxu0  ;;  %v4395_v7 = vpop.f32.mrb[20].mxu1 }
 0x26c   :  { %4686 = vst [vmem:[#allocation21_spill] sm:$0xff] %v4395_v7  ;;  %v1830_v3 = vpop.f32.mrb[21].mxu1  ;;  %v1735_v61 = vpop.f32.mrb[85].mxu0 }
 0x26d   :  { %v1684_v61 = vadd.f32 %v4333_v54, %v4203_v15  ;;  %v4414_v7 = vpop.permute.xlu1 %1354  ;;  %v4416_v0 = vpop.permute.xlu0 %1509 }
 0x26f   :  { %v4397_v5 = vpop.f32.mrb[86].mxu0  ;;  %v4399_v56 = vpop.f32.mrb[22].mxu1 }
 0x270   :  { %4687 = vst [vmem:[#allocation22_spill] sm:$0xff] %v4399_v56  ;;  %v1835_v53 = vpop.f32.mrb[23].mxu1  ;;  %v1740_v12 = vpop.f32.mrb[87].mxu0 }
 0x271   :  { %v4433_v34 = vpop.permute.xlu1 %1514 }
 0x273   :  { %v4405_v42 = vpop.f32.mrb[88].mxu0  ;;  %v4407_v63 = vpop.f32.mrb[24].mxu1 }
 0x274   :  { %4689 = vst [vmem:[#allocation26_spill] sm:$0xff] %v4407_v63  ;;  %v1840_v14 = vpop.f32.mrb[25].mxu1  ;;  %v1745_v33 = vpop.f32.mrb[89].mxu0 }
 0x275   :  { %v2035_v14 = vld [vmem:[%s4605_s5 + $0x8] sm:$0xff]  ;;  %v1689_v33 = vadd.f32 %v4337_v51, %v4214_v8  ;;  %v4435_v8 = vpop.permute.xlu0 %1439 }
 0x276   :  { %2114 = vmatprep.mubr.f32.mxu0 %v2035_v14  ;;  %v1699_v14 = vadd.f32 %v4349_v49, %v4266_v50 }
 0x277   :  { %v4409_v10 = vpop.f32.mrb[90].mxu0  ;;  %v1843_v3 = vpop.f32.mrb[26].mxu1 }
 0x278   :  { %v1844_v56 = vadd.f32 %v1843_v3, %v4216_v35  ;;  %v1845_v53 = vpop.f32.mrb[27].mxu1  ;;  %v1750_v12 = vpop.f32.mrb[91].mxu0 }
 0x27a   :  { %v2002_v39 = vmax.f32 %v1684_v61, %v1844_v56  ;;  %v1694_v56 = vadd.f32 %v4345_v6, %v4255_v40 }
 0x27b   :  { %v4418_v47 = vpop.f32.mrb[92].mxu0  ;;  %v1848_v63 = vpop.f32.mrb[28].mxu1 }
 0x27c   :  { %v1849_v15 = vadd.f32 %v1848_v63, %v4227_v44  ;;  %v1850_v35 = vpop.f32.mrb[29].mxu1  ;;  %v1755_v54 = vpop.f32.mrb[93].mxu0 }
 0x27d   :  { %v4451_v54 = vpop.permute.xlu1 %1444 }
 0x27e   :  { %v2003_v3 = vmax.f32 %v1689_v33, %v1849_v15  ;;  %v1704_v15 = vadd.f32 %v4357_v30, %v4307_v55  ;;  %v1709_v55 = vadd.f32 %v4361_v59, %v4309_v52  ;;  %v1719_v52 = vadd.f32 %v4373_v25, %v4325_v46 }
 0x27f   :  { %v4426_v53 = vpop.f32.mrb[94].mxu0  ;;  %v1853_v12 = vpop.f32.mrb[30].mxu1  ;;  %v1729_v46 = vadd.f32 %v4385_v26, %v4365_v43  ;;  %v1739_v43 = vadd.f32 %v4397_v5, %v4414_v7 }
 0x280   :  { %v4430_v61 = vpack.c.bf16 %v2003_v3, %v2002_v39  ;;  %v1854_v13 = vadd.f32 %v1853_v12, %v4268_v22  ;;  %v1855_v32 = vpop.f32.mrb[31].mxu1  ;;  %v1760_v31 = vpop.f32.mrb[95].mxu0 }
 0x282   :  { %v2004_v44 = vmax.f32 %v1694_v56, %v1854_v13 }
 0x283   :  { %v1763_v51 = vpop.f32.mrb[96].mxu0  ;;  %v1858_v63 = vpop.f32.mrb[32].mxu1 }
 0x284   :  { %v4440_v33 = vadd.f32 %v1763_v51, %v4177_v21  ;;  %v1859_v40 = vadd.f32 %v1858_v63, %v4279_v16  ;;  %v1860_v39 = vpop.f32.mrb[33].mxu1  ;;  %v1765_v6 = vpop.f32.mrb[97].mxu0 }
 0x285   :  { %v4453_v16 = vpop.permute.xlu0 %1599  ;;  %v4460_v63 = vpop.permute.xlu1 %1604 }
 0x286   :  { %v2005_v22 = vmax.f32 %v1699_v14, %v1859_v40  ;;  %v1714_v14 = vadd.f32 %v4369_v4, %v4323_v29  ;;  %v1724_v29 = vadd.f32 %v4381_v36, %v4355_v17  ;;  %v1734_v17 = vadd.f32 %v4393_v41, %v4403_v57 }
 0x287   :  { %v1768_v32 = vpop.f32.mrb[98].mxu0  ;;  %v1863_v31 = vpop.f32.mrb[34].mxu1 }
 0x288   :  { %v4445_v35 = vpack.c.bf16 %v2005_v22, %v2004_v44  ;;  %v4448_v13 = vadd.f32 %v1768_v32, %v4188_v60  ;;  %v1864_v50 = vadd.f32 %v1863_v31, %v4311_v58  ;;  %v1865_v49 = vpop.f32.mrb[35].mxu1  ;;  %v1770_v21 = vpop.f32.mrb[99].mxu0 }
 0x289   :  { %v1360_v22 = vpop.permute.xlu0 %1359 }
 0x28a   :  { %v2006_v3 = vmax.f32 %v1704_v15, %v1864_v50  ;;  %v1365_v15 = vpop.permute.xlu1 %1364  ;;  %v1744_v57 = vadd.f32 %v4405_v42, %v1360_v22 }
 0x28b   :  { %v4455_v12 = vpop.f32.mrb[100].mxu0  ;;  %v1868_v56 = vpop.f32.mrb[36].mxu1 }
 0x28c   :  { %v1869_v30 = vadd.f32 %v1868_v56, %v4313_v28  ;;  %v1870_v44 = vpop.f32.mrb[37].mxu1  ;;  %v1775_v60 = vpop.f32.mrb[101].mxu0 }
 0x28d   :  { %v1520_v49 = vpop.permute.xlu0 %1519 }
 0x28e   :  { %v2007_v51 = vmax.f32 %v1709_v55, %v1869_v30  ;;  %v1525_v55 = vpop.permute.xlu1 %1524 }
 0x28f   :  { %v1873_v58 = vpop.f32.mrb[38].mxu1 }
 0x290   :  { %v4464_v40 = vpack.c.bf16 %v2007_v51, %v2006_v3  ;;  %v1874_v39 = vadd.f32 %v1873_v58, %v4327_v1  ;;  %v1875_v6 = vpop.f32.mrb[39].mxu1 }
 0x291   :  { %v4478_v44 = vpop.permute.xlu0 %1449 }
 0x292   :  { %v2008_v32 = vmax.f32 %v1714_v14, %v1874_v39  ;;  %v4485_v14 = vpop.permute.xlu1 %1454 }
 0x293   :  { %v1878_v31 = vpop.f32.mrb[40].mxu1 }
 0x294   :  { %v1879_v28 = vadd.f32 %v1878_v31, %v4329_v9  ;;  %v1880_v59 = vpop.f32.mrb[41].mxu1 }
 0x295   :  { %v4487_v6 = vpop.permute.xlu0 %1609 }
 0x296   :  { %v2009_v50 = vmax.f32 %v1719_v52, %v1879_v28  ;;  %v4492_v52 = vpop.permute.xlu1 %1614 }
 0x297   :  { %v1883_v21 = vpop.f32.mrb[42].mxu1 }
 0x298   :  { %v4472_v4 = vpack.c.bf16 %v2009_v50, %v2008_v32  ;;  %v1884_v1 = vadd.f32 %v1883_v21, %v4367_v20  ;;  %v1885_v3 = vpop.f32.mrb[43].mxu1 }
 0x299   :  { %v1370_v50 = vpop.permute.xlu0 %1369 }
 0x29a   :  { %v2010_v56 = vmax.f32 %v1724_v29, %v1884_v1  ;;  %v1749_v1 = vadd.f32 %v4409_v10, %v1365_v15  ;;  %v1375_v7 = vpop.permute.xlu1 %1374 }
 0x29b   :  { %v1888_v30 = vpop.f32.mrb[44].mxu1 }
 0x29c   :  { %v1889_v9 = vadd.f32 %v1888_v30, %v4377_v19  ;;  %v1890_v25 = vpop.f32.mrb[45].mxu1 }
 0x29e   :  { %v2011_v60 = vmax.f32 %v1729_v46, %v1889_v9  ;;  %v1754_v46 = vadd.f32 %v4418_v47, %v1370_v50 }
 0x29f   :  { %v1893_v51 = vpop.f32.mrb[46].mxu1 }
 0x2a0   :  { %v4482_v36 = vpack.c.bf16 %v2011_v60, %v2010_v56  ;;  %v1894_v20 = vadd.f32 %v1893_v51, %v4416_v0  ;;  %v1895_v58 = vpop.f32.mrb[47].mxu1  ;;  %v1530_v56 = vpop.permute.xlu0 %1529  ;;  %v1759_v51 = vadd.f32 %v4426_v53, %v1375_v7  ;;  %v1774_v53 = vadd.f32 %v4455_v12, %v4229_v45 }
 0x2a1   :  { %v1784_v45 = vadd.f32 %v4339_v38, %v4281_v27  ;;  %v4694_v38 = vld [vmem:[#allocation15_spill] sm:$0xff] }
 0x2a2   :  { %v2012_v39 = vmax.f32 %v1734_v17, %v1894_v20 }
 0x2a3   :  { %v1898_v26 = vpop.f32.mrb[48].mxu1 }
 0x2a4   :  { %v1899_v19 = vadd.f32 %v1898_v26, %v4433_v34  ;;  %v1900_v32 = vpop.f32.mrb[49].mxu1 }
 0x2a6   :  { %v2013_v31 = vmax.f32 %v1739_v43, %v1899_v19 }
 0x2a7   :  { %v1903_v41 = vpop.f32.mrb[50].mxu1 }
 0x2a8   :  { %v4495_v0 = vpack.c.bf16 %v2013_v31, %v2012_v39  ;;  %v1904_v28 = vadd.f32 %v1903_v41, %v1520_v49  ;;  %v1905_v59 = vpop.f32.mrb[51].mxu1  ;;  %v1535_v49 = vpop.permute.xlu1 %1534 }
 0x2aa   :  { %v2014_v21 = vmax.f32 %v1744_v57, %v1904_v28 }
 0x2ab   :  { %v1908_v29 = vpop.f32.mrb[52].mxu1 }
 0x2ac   :  { %v1909_v3 = vadd.f32 %v1908_v29, %v1525_v55  ;;  %v1910_v5 = vpop.f32.mrb[53].mxu1 }
 0x2ae   :  { %v2015_v34 = vmax.f32 %v1749_v1, %v1909_v3 }
 0x2af   :  { %v1913_v30 = vpop.f32.mrb[54].mxu1 }
 0x2b0   :  { %v4499_v9 = vpack.c.bf16 %v2015_v34, %v2014_v21  ;;  %v1914_v42 = vadd.f32 %v1913_v30, %v1530_v56  ;;  %v1915_v22 = vpop.f32.mrb[55].mxu1  ;;  %v4692_v56 = vld [vmem:[#allocation7_spill] sm:$0xff]  ;;  %v4693_v30 = vld [vmem:[#allocation24_spill] sm:$0xff] }
 0x2b1   :  { %v1794_v27 = vadd.f32 %v4693_v30, %v4692_v56 }
 0x2b2   :  { %v2016_v25 = vmax.f32 %v1754_v46, %v1914_v42 }
 0x2b3   :  { %v1918_v60 = vpop.f32.mrb[56].mxu1 }
 0x2b4   :  { %v1919_v17 = vadd.f32 %v1918_v60, %v1535_v49  ;;  %v1920_v20 = vpop.f32.mrb[57].mxu1  ;;  %v4696_v49 = vld [vmem:[#allocation28_spill] sm:$0xff] }
 0x2b5   :  { %v4697_v60 = vld [vmem:[#allocation8_spill] sm:$0xff] }
 0x2b6   :  { %v2017_v10 = vmax.f32 %v1759_v51, %v1919_v17 }
 0x2b7   :  { %v1923_v15 = vpop.f32.mrb[58].mxu1 }
 0x2b8   :  { %v4502_v55 = vpack.c.bf16 %v2017_v10, %v2016_v25  ;;  %v1924_v58 = vadd.f32 %v1923_v15, %v4190_v37  ;;  %v1925_v39 = vpop.f32.mrb[59].mxu1  ;;  %v4698_v15 = vld [vmem:[#allocation18_spill] sm:$0xff] }
 0x2ba   :  { %v2018_v47 = vmax.f32 %v4440_v33, %v1924_v58  ;;  %v1779_v33 = vadd.f32 %v4335_v62, %v4240_v18  ;;  %v4691_v62 = vld [vmem:[#allocation5_spill] sm:$0xff] }
 0x2bb   :  { %v1928_v26 = vpop.f32.mrb[60].mxu1  ;;  %v4699_v58 = vld [vmem:[#allocation25_spill] sm:$0xff] }
 0x2bc   :  { %v1929_v43 = vadd.f32 %v1928_v26, %v4201_v11  ;;  %v1930_v19 = vpop.f32.mrb[61].mxu1  ;;  %v1804_v39 = vadd.f32 %v4699_v58, %v4698_v15 }
 0x2be   :  { %v2019_v32 = vmax.f32 %v4448_v13, %v1929_v43 }
 0x2bf   :  { %v1933_v31 = vpop.f32.mrb[62].mxu1 }
 0x2c0   :  { %v1934_v41 = vadd.f32 %v1933_v31, %v4242_v24  ;;  %v1935_v57 = vpop.f32.mrb[63].mxu1  ;;  %v2736_v28 = vpack.c.bf16 %v2019_v32, %v2018_v47  ;;  %v4700_v47 = vld [vmem:[#allocation9_spill] sm:$0xff] }
 0x2c1   :  { %v4703_v57 = vld [vmem:[#allocation11_spill] sm:$0xff] }
 0x2c2   :  { %v2020_v59 = vmax.f32 %v1774_v53, %v1934_v41  ;;  %2737 = vmatprep.subr.bf16.mxu0 %v2736_v28  ;;  %v4702_v53 = vld [vmem:[#allocation12_spill] sm:$0xff] }
 0x2c3   :  { %v1938_v37 = vpop.f32.mrb[64].mxu1  ;;  %2739 = vmatpush3.bf16.msra.mxu0 %v4430_v61  ;;  %v4690_v61 = vld [vmem:[#allocation20_spill] sm:$0xff] }
 0x2c4   :  { %v1939_v11 = vadd.f32 %v1938_v37, %v4253_v48  ;;  %v1940_v50 = vpop.f32.mrb[65].mxu1  ;;  %v1789_v18 = vadd.f32 %v4690_v61, %v4292_v23 }
 0x2c5   :  { %v4705_v50 = vld [vmem:[#allocation29_spill] sm:$0xff] }
 0x2c6   :  { %v2021_v13 = vmax.f32 %v1779_v33, %v1939_v11  ;;  %v4704_v11 = vld [vmem:[#allocation13_spill] sm:$0xff] }
 0x2c7   :  { %v1943_v21 = vpop.f32.mrb[66].mxu1 }
 0x2c8   :  { %v1944_v24 = vadd.f32 %v1943_v21, %v4294_v2  ;;  %v1945_v12 = vpop.f32.mrb[67].mxu1  ;;  %v2740_v29 = vpack.c.bf16 %v2021_v13, %v2020_v59  ;;  %v1814_v13 = vadd.f32 %v4705_v50, %v4704_v11  ;;  %v4706_v21 = vld [vmem:[#allocation19_spill] sm:$0xff] }
 0x2ca   :  { %v2022_v1 = vmax.f32 %v1784_v45, %v1944_v24  ;;  %2741 = vmatprep.subr.bf16.mxu0 %v2740_v29 }
 0x2cb   :  { %v1948_v3 = vpop.f32.mrb[68].mxu1  ;;  %2743 = vmatpush3.bf16.msra.mxu0 %v4445_v35  ;;  %v4695_v35 = vld [vmem:[#allocation6_spill] sm:$0xff] }
 0x2cc   :  { %v1949_v48 = vadd.f32 %v1948_v3, %v4691_v62  ;;  %v1950_v5 = vpop.f32.mrb[69].mxu1  ;;  %v1799_v23 = vadd.f32 %v4696_v49, %v4695_v35  ;;  %v4708_v3 = vld [vmem:[#allocation14_spill] sm:$0xff] }
 0x2ce   :  { %v2023_v7 = vmax.f32 %v1789_v18, %v1949_v48  ;;  %v4709_v18 = vld [vmem:[#allocation23_spill] sm:$0xff] }
 0x2cf   :  { %v1953_v34 = vpop.f32.mrb[70].mxu1 }
 0x2d0   :  { %v1954_v2 = vadd.f32 %v1953_v34, %v4694_v38  ;;  %v1955_v46 = vpop.f32.mrb[71].mxu1  ;;  %v2744_v42 = vpack.c.bf16 %v2023_v7, %v2022_v1  ;;  %v4710_v34 = vld [vmem:[#allocation16_spill] sm:$0xff] }
 0x2d1   :  { %v1824_v56 = vadd.f32 %v4710_v34, %v4435_v8  ;;  %v2256_v34 = vld [vmem:[%s4609_s9] sm:$0xff] }
 0x2d2   :  { %v2024_v22 = vmax.f32 %v1794_v27, %v1954_v2  ;;  %2745 = vmatprep.subr.bf16.mxu0 %v2744_v42 }
 0x2d3   :  { %v1958_v25 = vpop.f32.mrb[72].mxu1  ;;  %2747 = vmatpush3.bf16.msra.mxu0 %v4464_v40  ;;  %v4701_v40 = vld [vmem:[#allocation10_spill] sm:$0xff] }
 0x2d4   :  { %v1959_v51 = vadd.f32 %v1958_v25, %v4697_v60  ;;  %v1960_v17 = vpop.f32.mrb[73].mxu1  ;;  %v1809_v41 = vadd.f32 %v4702_v53, %v4701_v40 }
 0x2d6   :  { %v2025_v20 = vmax.f32 %v1799_v23, %v1959_v51  ;;  %v4712_v23 = vld [vmem:[#allocation22_spill] sm:$0xff] }
 0x2d7   :  { %v1963_v10 = vpop.f32.mrb[74].mxu1  ;;  %v1834_v8 = vadd.f32 %v4712_v23, %v4478_v44  ;;  %v2034_v44 = vld [vmem:[%s4605_s5] sm:$0xff] }
 0x2d8   :  { %v1964_v26 = vadd.f32 %v1963_v10, %v4700_v47  ;;  %v1965_v43 = vpop.f32.mrb[75].mxu1  ;;  %v2748_v19 = vpack.c.bf16 %v2025_v20, %v2024_v22 }
 0x2da   :  { %v2026_v32 = vmax.f32 %v1804_v39, %v1964_v26  ;;  %2749 = vmatprep.subr.bf16.mxu0 %v2748_v19  ;;  %v2048_v19 = vpop.permute.xlu1 %2047 }
 0x2db   :  { %v1968_v31 = vpop.f32.mrb[76].mxu1  ;;  %2751 = vmatpush3.bf16.msra.mxu0 %v4472_v4  ;;  %v4707_v4 = vld [vmem:[#allocation17_spill] sm:$0xff] }
 0x2dc   :  { %v1969_v28 = vadd.f32 %v1968_v31, %v4703_v57  ;;  %v1970_v59 = vpop.f32.mrb[77].mxu1  ;;  %v1819_v61 = vadd.f32 %v4708_v3, %v4707_v4  ;;  %v2128_v57 = vld [vmem:[%s4607_s7 + $0x10] sm:$0xff] }
 0x2dd   :  { %v2129_v59 = vld [vmem:[%s4607_s7 + $0x18] sm:$0xff] }
 0x2de   :  { %v2027_v37 = vmax.f32 %v1809_v41, %v1969_v28  ;;  %v2127_v41 = vld [vmem:[%s4607_s7 + $0x8] sm:$0xff]  ;;  %v4714_v28 = vmov 0.0|0.0  }
 0x2df   :  { %v1973_v33 = vpop.f32.mrb[78].mxu1 }
 0x2e0   :  { %v1974_v45 = vadd.f32 %v1973_v33, %v4706_v21  ;;  %v1975_v24 = vpop.f32.mrb[79].mxu1  ;;  %v2752_v12 = vpack.c.bf16 %v2027_v37, %v2026_v32  ;;  %v2043_v32 = vpop.permute.xlu0 %2042  ;;  %v2840_v37 = vmov 0.0  }
 0x2e1   :  { %v2142_v33 = vpop.permute.xlu1 %2141 }
 0x2e2   :  { %v2028_v29 = vmax.f32 %v1814_v13, %v1974_v45  ;;  %2753 = vmatprep.subr.bf16.mxu0 %v2752_v12 }
 0x2e3   :  { %v1978_v1 = vpop.f32.mrb[80].mxu1  ;;  %2755 = vmatpush3.bf16.msra.mxu0 %v4482_v36  ;;  %v4711_v36 = vld [vmem:[#allocation21_spill] sm:$0xff] }
 0x2e4   :  { %v1979_v62 = vadd.f32 %v1978_v1, %v4709_v18  ;;  %v1980_v48 = vpop.f32.mrb[81].mxu1  ;;  %v1829_v42 = vadd.f32 %v4711_v36, %v4451_v54  ;;  %v2137_v11 = vpop.permute.xlu0 %2136 }
 0x2e5   :  { %v2152_v12 = vpop.permute.xlu1 %2151 }
 0x2e6   :  { %v2029_v5 = vmax.f32 %v1819_v61, %v1979_v62 }
 0x2e7   :  { %v1983_v7 = vpop.f32.mrb[82].mxu1 }
 0x2e8   :  { %v1984_v30 = vadd.f32 %v1983_v7, %v4453_v16  ;;  %v1985_v27 = vpop.f32.mrb[83].mxu1  ;;  %v2756_v38 = vpack.c.bf16 %v2029_v5, %v2028_v29  ;;  %v2147_v4 = vpop.permute.xlu0 %2146 }
 0x2ea   :  { %v2030_v2 = vmax.f32 %v1824_v56, %v1984_v30  ;;  %2757 = vmatprep.subr.bf16.mxu0 %v2756_v38 }
 0x2eb   :  { %v1988_v46 = vpop.f32.mrb[84].mxu1  ;;  %2759 = vmatpush3.bf16.msra.mxu0 %v4495_v0  ;;  %v4713_v0 = vld [vmem:[#allocation26_spill] sm:$0xff] }
 0x2ec   :  { %v1989_v22 = vadd.f32 %v1988_v46, %v4460_v63  ;;  %v1990_v25 = vpop.f32.mrb[85].mxu1  ;;  %v1839_v54 = vadd.f32 %v4713_v0, %v4485_v14  ;;  %v2036_v14 = vld [vmem:[%s4605_s5 + $0x10] sm:$0xff]  ;;  %v2261_v56 = vpop.permute.xlu0 %2260 }
 0x2ee   :  { %v2031_v35 = vmax.f32 %v1829_v42, %v1989_v22 }
 0x2ef   :  { %v1993_v49 = vpop.f32.mrb[86].mxu1 }
 0x2f0   :  { %v1994_v16 = vadd.f32 %v1993_v49, %v4487_v6  ;;  %v1995_v60 = vpop.f32.mrb[87].mxu1  ;;  %v2760_v51 = vpack.c.bf16 %v2031_v35, %v2030_v2  ;;  %v2037_v6 = vld [vmem:[%s4605_s5 + $0x18] sm:$0xff] }
 0x2f2   :  { %v2032_v17 = vmax.f32 %v1834_v8, %v1994_v16  ;;  %2761 = vmatprep.subr.bf16.mxu0 %v2760_v51 }
 0x2f3   :  { %v1998_v20 = vpop.f32.mrb[88].mxu1  ;;  %2763 = vmatpush3.bf16.msra.mxu0 %v4499_v9 }
 0x2f4   :  { %v1999_v63 = vadd.f32 %v1998_v20, %v4492_v52  ;;  %v2000_v10 = vpop.f32.mrb[89].mxu1  ;;  %v2126_v52 = vld [vmem:[%s4607_s7] sm:$0xff] }
 0x2f6   :  { %v2033_v15 = vmax.f32 %v1839_v54, %v1999_v63 }
 0x2f8   :  { %v2764_v58 = vpack.c.bf16 %v2033_v15, %v2032_v17 }
 0x2fa   :  { %2765 = vmatprep.subr.bf16.mxu0 %v2764_v58 }
 0x2fb   :  { %2767 = vmatpush3.bf16.msra.mxu0 %v4502_v55 }
 0x2fe   :  { %2115 = vmatmul.mubr.f32.vlgmr.msra.gmra.mrb[102].mxu0 %v2034_v44 }
 0x2ff   :  { %2119 = vmatprep.mubr.f32.mxu0 %v2037_v6 }
 0x302   :  { %2120 = vmatmul.mubr.f32.gmra.mrb[104].mxu0 %v2036_v14 }
 0x303   :  { %2655 = vmatprep.mubr.msk.f32.mxu0 %vm2154_vm1, %v2126_v52 }
 0x3d1   :  { %v2525_v9 = vpop.f32.mrb[102].mxu0 }
 0x3d2   :  { %v2526_v55 = vpop.f32.mrb[103].mxu0 }
 0x3d3   :  { %v2527_v39 = vadd.f32 %v2526_v55, %v2525_v9 }
 0x3d5   :  { %v2528_v47 = vpop.f32.mrb[104].mxu0  ;;  %v2117_v31 = vadd.f32 %v2527_v39, %v2043_v32 }
 0x3d6   :  { %v2529_v26 = vpop.f32.mrb[105].mxu0 }
 0x3d7   :  { %v2530_v43 = vadd.f32 %v2529_v26, %v2528_v47 }
 0x3d9   :  { %v2122_v40 = vadd.f32 %v2530_v43, %v2048_v19 }
 0x3db   :  { %v2125_v53 = vmax.f32 %v2117_v31, %v2122_v40 }
 0x3dd   :  { %2653 = vmatprep.subr.mxu0 %v2125_v53 }
 0x3de   :  { %2654 = vmatpush3.msra.mxu0 %v2125_v53 }
 0x3df   :  { %2656 = vmatmul.mubr.msk.f32.vlgmr.msra.gmra.mrb[106].mxu0 %vm2154_vm1, %v2127_v41  ;;  %2768 = vmatprep.subr.bf16.mxu0 %v4714_v28 }
 0x3e0   :  { %2658 = vmatprep.mubr.msk.f32.mxu0 %vm2154_vm1, %v2128_v57 }
 0x3e3   :  { %2659 = vmatmul.mubr.msk.f32.gmra.mrb[108].mxu0 %vm2154_vm1, %v2129_v59 }
 0x3e4   :  { %2669 = vmatprep.mubr.msk.f32.mxu0 %vm2839_vm2, %v2840_v37 }
 0x4b2   :  { %v2657_v50 = vpop.f32.mrb[106].mxu0 }
 0x4b3   :  { %v2239_v13 = vadd.f32 %v2657_v50, %v2142_v33  ;;  %v2233_v21 = vpop.f32.mrb[107].mxu0 }
 0x4b4   :  { %v2234_v45 = vadd.f32 %v2233_v21, %v2137_v11 }
 0x4b5   :  { %v2253_v24 = vmax.f32 %v2239_v13, 0.0 }
 0x4b6   :  { %v2252_v29 = vmax.f32 %v2234_v45, 0.0  ;;  %v2660_v1 = vpop.f32.mrb[108].mxu0 }
 0x4b7   :  { %v2249_v3 = vadd.f32 %v2660_v1, %v2152_v12  ;;  %v2243_v61 = vpop.f32.mrb[109].mxu0 }
 0x4b8   :  { %v2769_v18 = vpack.c.bf16 %v2253_v24, %v2252_v29  ;;  %v2244_v62 = vadd.f32 %v2243_v61, %v2147_v4 }
 0x4b9   :  { %v2255_v48 = vmax.f32 %v2249_v3, 0.0 }
 0x4ba   :  { %v2254_v5 = vmax.f32 %v2244_v62, 0.0  ;;  %2770 = vmatpush3.bf16.msra.mxu0 %v2769_v18 }
 0x4bb   :  { %2771 = vmatprep.subr.bf16.mxu0 %v4714_v28 }
 0x4bc   :  { %v2772_v7 = vpack.c.bf16 %v2255_v48, %v2254_v5 }
 0x4be   :  { %2773 = vmatpush3.bf16.msra.mxu0 %v2772_v7 }
 0x4c1   :  { %2670 = vmatmul.mubr.msk.f32.vlgmr.msra.gmra.mrb[110].mxu0 %vm2263_vm3, %v2256_v34 }
 0x594   :  { %v2333_v30 = vpop.f32.mrb[110].mxu0 }
 0x595   :  { %v2334_v27 = vadd.f32 %v2333_v30, %v2261_v56  ;;  %v2671_v38 = vpop.f32.mrb[111].mxu0 }
 0x597   :  { %2337 = vst [vmem:[#allocation2] sm:$0xff] %v2334_v27 }
 0x598   :  { %2824 = shalt.err (!%p2821_p4)
}
 0x599   :  { %s2825_s9 = scalar_lea.hbm %s4611_s11, 128 }
 0x59a   :  { %p2826_p5 = scmp.ne.s32.totalorder %s4611_s11, %s2825_s9  ;;  %p2829_p6 = scmp.lt.u32.totalorder %s2825_s9, %s4611_s11 }
 0x59c   :  { %p2831_p7 = pnand %p2829_p6, %p2826_p5 }
 0x59e   :  { %2834 = shalt.err (!%p2831_p7)
}
 0x59f   :  { %2347 = dma.vmem_to_hbm [thread:$0]  %s2345_s26, 128, %s4611_s11, [#allocation3]  }
 0x5a0   :  { %2835 = dma.done.wait [#allocation3], 128  }
 0x5a1   :  { %2836 = vsyncadd [#allocation3], 4294967168 }
 0x5a2   :  { %2351 = vsyncpa [#allocation3], 1 }

</bundles_post_ra>
